<compile_context>
chip_gen: v6e
topology: v6e:2x2x1
jax: 0.10.0
libtpu: 0.0.40
codegen_flags: <defaults>
</compile_context>

<pallas_src>
import functools

import jax
import jax.numpy as jnp
from jax.experimental import pallas as pl
from jax.experimental.pallas import tpu as pltpu


def _round_up(x, m):
    return ((x + m - 1) // m) * m


# -----------------------------------------------------------------------------
# Encoder kernel: im2col matmul + ReLU + global average pool.
# The f32 activation is capped at (sb*HW, Op) by a static sub-batch loop.
# -----------------------------------------------------------------------------
def _conv_encoder_kernel(p_ref, w_ref, o_ref, *, bn, hw, sb):
    # p_ref: (bn*hw, K) bf16 im2col patches (K unpadded; Mosaic pads in VMEM)
    # w_ref: (K, Op)    bf16 flattened conv weight (zero-padded to Op lanes)
    # o_ref: (bn, Op)   bf16 pooled features
    w = w_ref[...]                                   # hoisted: loaded once
    inv_hw = jnp.float32(1.0 / hw)
    for s in range(bn // sb):                        # static sub-batch loop
        r0 = s * sb * hw
        y = jnp.dot(p_ref[r0:r0 + sb * hw, :], w,
                    preferred_element_type=jnp.float32)      # (sb*hw, Op) f32
        y = jnp.maximum(y, 0.0).reshape(sb, hw, -1)          # ReLU
        o_ref[s * sb:(s + 1) * sb, :] = (
            (jnp.sum(y, axis=1) * inv_hw).astype(o_ref.dtype))   # GAP -> bf16


def conv_encoder(x_nhwc, w):
    """x_nhwc: (N, H, W, Cin) f32; w: (3, 3, Cin, Cout) f32.

    Returns (N, Op) bf16 with Op = round_up(Cout, 128); columns >= Cout are 0.
    """
    N, H, W, Cin = x_nhwc.shape
    Cout = w.shape[-1]
    HW = H * W
    K = 9 * Cin
    Op = _round_up(Cout, 128)

    # im2col in the wrapper (layout plumbing).  K is NOT padded to 128 in HBM:
    # the patches block's last dim equals the full array dim (legal), so only
    # the real K columns travel through HBM.
    xp = jnp.pad(x_nhwc, ((0, 0), (1, 1), (1, 1), (0, 0)))
    patches = jnp.stack([xp[:, dh:dh + H, dw:dw + W, :]
                         for dh in range(3) for dw in range(3)], axis=3)
    patches = patches.reshape(N * HW, K).astype(jnp.bfloat16)
    w_mat = jnp.pad(w.reshape(K, Cout),
                    ((0, 0), (0, Op - Cout))).astype(jnp.bfloat16)

    # Batch tiling: >=2 grid steps when N allows (keeps both v7x TCs busy and
    # lets the patch DMAs pipeline); demo N=8 collapses to a single block.
    if N % 32 == 0:
        bn = 32
    elif N % 8 == 0:
        bn = 8
    else:
        bn = N
    sb = 8 if bn % 8 == 0 else bn

    cost = pl.CostEstimate(
        flops=2 * N * HW * K * Op,
        transcendentals=0,
        bytes_accessed=N * HW * K * 2 + K * Op * 2 + N * Op * 2)

    out = pl.pallas_call(
        functools.partial(_conv_encoder_kernel, bn=bn, hw=HW, sb=sb),
        out_shape=jax.ShapeDtypeStruct((N, Op), jnp.bfloat16),
        grid_spec=pltpu.PrefetchScalarGridSpec(
            num_scalar_prefetch=0,
            grid=(N // bn,),
            in_specs=[
                pl.BlockSpec((bn * HW, K), lambda n: (n, 0)),
                pl.BlockSpec((K, Op), lambda n: (0, 0)),
            ],
            out_specs=pl.BlockSpec((bn, Op), lambda n: (n, 0)),
        ),
        compiler_params=pltpu.CompilerParams(
            dimension_semantics=("parallel",),
            vmem_limit_bytes=32 * 1024 * 1024),
        cost_estimate=cost,
    )(patches, w_mat)
    return out


# -----------------------------------------------------------------------------
# GCN kernel A: supports = fea @ [W_0 | W_1 | ... | W_{R-1}]
# One wide (Dp, R*Op) matmul -> R*128 output lanes for the MXU.
# -----------------------------------------------------------------------------
def _supports_kernel(fea_ref, w_ref, sup_ref):
    sup_ref[...] = jnp.dot(
        fea_ref[...], w_ref[...],
        preferred_element_type=jnp.float32).astype(sup_ref.dtype)


# -----------------------------------------------------------------------------
# GCN kernel B: out = fea_out @ (selfweight*W_self) + sum_r adj_r @ support_r
#                     + (b_self + sum_r b_r)
# Grid: (M tiles [parallel], relations [arbitrary], node tiles [arbitrary]);
# f32 VMEM accumulator initialized with the self branch, finalized with bias.
# -----------------------------------------------------------------------------
def _gcn_accum_kernel(feaout_ref, wself_ref, sup_ref, adj_ref, b_ref,
                      out_ref, acc_ref):
    r = pl.program_id(1)
    kn = pl.program_id(2)

    @pl.when((r == 0) & (kn == 0))
    def _init():
        # Self branch (selfweight folded into wself), f32 MXU accumulation.
        acc_ref[...] = jnp.dot(feaout_ref[...], wself_ref[...],
                               preferred_element_type=jnp.float32)

    acc_ref[...] += jnp.dot(adj_ref[0], sup_ref[...],
                            preferred_element_type=jnp.float32)

    @pl.when((r == pl.num_programs(1) - 1) & (kn == pl.num_programs(2) - 1))
    def _fin():
        out_ref[...] = acc_ref[...] + b_ref[...]


def mrgcn_gcn(fea, w_self, b_self, w_rel, b_rel, adj, k, selfweight):
    """fea: (N, Dp) bf16 lane-padded features (cols >= D are zero);
    w_self: (D, O); b_self: (O,); w_rel: (R, D, O); b_rel: (R, O);
    adj: (R, M, N) with M = N - k.  Returns (M, O) f32."""
    N, Dp = fea.shape
    D, O = w_self.shape
    R = w_rel.shape[0]
    M = N - k
    Op = _round_up(O, 128)

    # ---- tile sizes: M tiles (parallel), node-reduction tiles (arbitrary) ----
    if M <= 256:
        tm = _round_up(M, 8)
        Mp = tm
    else:
        tm = 256
        Mp = _round_up(M, tm)
    if N <= 512:
        tkn = N
        Np = N
    else:
        tkn = 512
        Np = _round_up(N, tkn)

    # ---- padded / pre-cast operands (static per graph; hoisted under jit) ----
    fea_p = jnp.pad(fea, ((0, Np - N), (0, 0)))                    # (Np, Dp)
    fea_out = jnp.pad(fea[k:], ((0, Mp - M), (0, 0)))              # (Mp, Dp)
    w_cat = jnp.pad(w_rel, ((0, 0), (0, Dp - D), (0, Op - O)))     # (R, Dp, Op)
    w_cat = jnp.transpose(w_cat, (1, 0, 2)).reshape(Dp, R * Op)
    w_cat = w_cat.astype(jnp.bfloat16)
    w_self_p = jnp.pad(selfweight * w_self,
                       ((0, Dp - D), (0, Op - O))).astype(jnp.bfloat16)
    b_total = jnp.pad(b_self + b_rel.sum(axis=0), (0, Op - O))
    b_total = b_total[None, :].astype(jnp.float32)                 # (1, Op)
    adj_p = jnp.pad(adj, ((0, 0), (0, Mp - M), (0, Np - N))).astype(jnp.bfloat16)

    # ---- kernel A: wide supports projection ----
    bs = 256 if (Np > 256 and Np % 256 == 0) else Np
    supports = pl.pallas_call(
        _supports_kernel,
        out_shape=jax.ShapeDtypeStruct((Np, R * Op), jnp.bfloat16),
        grid_spec=pltpu.PrefetchScalarGridSpec(
            num_scalar_prefetch=0,
            grid=(Np // bs,),
            in_specs=[
                pl.BlockSpec((bs, Dp), lambda i: (i, 0)),
                pl.BlockSpec((Dp, R * Op), lambda i: (0, 0)),
            ],
            out_specs=pl.BlockSpec((bs, R * Op), lambda i: (i, 0)),
        ),
        compiler_params=pltpu.CompilerParams(
            dimension_semantics=("parallel",),
            vmem_limit_bytes=32 * 1024 * 1024),
        cost_estimate=pl.CostEstimate(
            flops=2 * Np * Dp * R * Op,
            transcendentals=0,
            bytes_accessed=Np * Dp * 2 + Dp * R * Op * 2 + Np * R * Op * 2),
    )(fea_p, w_cat)

    # ---- kernel B: tiled adjacency contraction with f32 accumulator ----
    grid = (Mp // tm, R, Np // tkn)
    out = pl.pallas_call(
        _gcn_accum_kernel,
        out_shape=jax.ShapeDtypeStruct((Mp, Op), jnp.float32),
        grid_spec=pltpu.PrefetchScalarGridSpec(
            num_scalar_prefetch=0,
            grid=grid,
            in_specs=[
                pl.BlockSpec((tm, Dp), lambda m, r, kn: (m, 0)),       # fea_out
                pl.BlockSpec((Dp, Op), lambda m, r, kn: (0, 0)),       # W_self
                pl.BlockSpec((tkn, Op), lambda m, r, kn: (kn, r)),     # supports
                pl.BlockSpec((1, tm, tkn), lambda m, r, kn: (r, m, kn)),  # adj
                pl.BlockSpec((1, Op), lambda m, r, kn: (0, 0)),        # bias
            ],
            out_specs=pl.BlockSpec((tm, Op), lambda m, r, kn: (m, 0)),
            scratch_shapes=[pltpu.VMEM((tm, Op), jnp.float32)],
        ),
        compiler_params=pltpu.CompilerParams(
            dimension_semantics=("parallel", "arbitrary", "arbitrary"),
            vmem_limit_bytes=32 * 1024 * 1024),
        cost_estimate=pl.CostEstimate(
            flops=2 * Mp * Dp * Op + 2 * R * Mp * Np * Op,
            transcendentals=0,
            bytes_accessed=(Mp * Dp + Dp * Op + Np * R * Op
                            + R * Mp * Np) * 2 + Op * 4 + Mp * Op * 4),
    )(fea_out, w_self_p, supports, adj_p, b_total)
    return out[:M, :O]


# -----------------------------------------------------------------------------
# Full MRGCN forward ('partly' sharing): encoder -> multi-relational GCN.
# -----------------------------------------------------------------------------
def mrgcn_forward(x_nchw, k, adj_mats, params, selfweight=1.0):
    # PyTorch NCHW -> NHWC for the TPU conv kernel.
    x_nhwc = jnp.transpose(x_nchw, (0, 2, 3, 1))
    fea_in = conv_encoder(x_nhwc, params["conv_w"])              # (N, Dp) bf16
    rel_names = sorted(adj_mats.keys())
    adj = jnp.stack([adj_mats[r] for r in rel_names], axis=0)    # (R, M, N)
    w_rel = jnp.stack([params["gcn"][r]["w"] for r in rel_names], 0)
    b_rel = jnp.stack([params["gcn"][r]["b"] for r in rel_names], 0)
    return mrgcn_gcn(fea_in, params["gcn"]["self"]["w"],
                     params["gcn"]["self"]["b"],
                     w_rel, b_rel, adj, k, selfweight)


# -----------------------------------------------------------------------------
# Pure-JAX f32 reference (for a sanity check).
# -----------------------------------------------------------------------------
def mrgcn_reference(x_nchw, k, adj_mats, params, selfweight=1.0):
    x = jnp.transpose(x_nchw, (0, 2, 3, 1))
    N, H, W, Cin = x.shape
    w = params["conv_w"]
    Cout = w.shape[-1]
    xp = jnp.pad(x, ((0, 0), (1, 1), (1, 1), (0, 0)))
    acc = jnp.zeros((N, H, W, Cout), jnp.float32)
    for dh in range(3):
        for dw in range(3):
            acc = acc + jnp.einsum("nhwc,co->nhwo",
                                   xp[:, dh:dh + H, dw:dw + W, :], w[dh, dw])
    fea_in = jnp.mean(jnp.maximum(acc, 0.0), axis=(1, 2))        # (N, D)
    fea = (selfweight * fea_in[k:] @ params["gcn"]["self"]["w"]
           + params["gcn"]["self"]["b"])
    for r in sorted(adj_mats.keys()):
        fea = fea + (adj_mats[r] @ (fea_in @ params["gcn"][r]["w"])
                     + params["gcn"][r]["b"])
    return fea


if __name__ == "__main__":
    # Small, deterministic configuration.
    N, Cin, H, W = 8, 4, 16, 16          # N images, NCHW on the PyTorch side
    in_dim, out_dim = 32, 32             # encoder feature dim / GCN output dim
    k = 2                                # first k nodes are context-only
    selfweight = 1.0

    key = jax.random.PRNGKey(0)
    keys = jax.random.split(key, 8)

    x = jax.random.normal(keys[0], (N, Cin, H, W), jnp.float32)
    adj_mats = {
        "rel0": jax.random.uniform(keys[1], (N - k, N), jnp.float32),
        "rel1": jax.random.uniform(keys[2], (N - k, N), jnp.float32),
    }
    params = {
        "conv_w": 0.1 * jax.random.normal(keys[3], (3, 3, Cin, in_dim),
                                          jnp.float32),
        "gcn": {
            "self": {"w": 0.1 * jax.random.normal(keys[4], (in_dim, out_dim),
                                                  jnp.float32),
                     "b": jnp.zeros((out_dim,), jnp.float32)},
            "rel0": {"w": 0.1 * jax.random.normal(keys[5], (in_dim, out_dim),
                                                  jnp.float32),
                     "b": 0.01 * jnp.ones((out_dim,), jnp.float32)},
            "rel1": {"w": 0.1 * jax.random.normal(keys[6], (in_dim, out_dim),
                                                  jnp.float32),
                     "b": -0.01 * jnp.ones((out_dim,), jnp.float32)},
        },
    }

    out = mrgcn_forward(x, k, adj_mats, params, selfweight)
    out = jax.block_until_ready(out)
    assert out.shape == (N - k, out_dim), out.shape

    ref = mrgcn_reference(x, k, adj_mats, params, selfweight)
    # bf16 matmul operands with f32 accumulation vs. pure-f32 reference.
    assert jnp.allclose(out, ref, rtol=3e-2, atol=3e-2), \
        float(jnp.max(jnp.abs(out - ref)))

    print("KERNEL_OK")
</pallas_src>

<mosaic_0001>
module attributes {stable_mosaic.version = 11 : i64} {
  func.func @_conv_encoder_kernel(%arg0: i32, %arg1: memref<2048x36xbf16, #tpu.memory_space<vmem>>, %arg2: memref<36x128xbf16, #tpu.memory_space<vmem>>, %arg3: memref<8x128xbf16, #tpu.memory_space<vmem>>) attributes {dimension_semantics = [#tpu.dimension_semantics<parallel>], iteration_bounds = array<i64: 1>, scalar_prefetch = 0 : i64, scratch_operands = 0 : i64, tpu.core_type = #tpu.core_type<tc>, window_params = [{transform_indices = @transform_0, window_bounds = array<i64: 2048, 36>}, {pipeline_mode = #tpu.pipeline_mode<synchronous>, transform_indices = @transform_1, window_bounds = array<i64: 36, 128>}, {transform_indices = @transform_2, window_bounds = array<i64: 8, 128>}]} {
    %c0 = arith.constant 0 : index
    %c0_0 = arith.constant 0 : index
    %0 = vector.load %arg2[%c0, %c0_0] : memref<36x128xbf16, #tpu.memory_space<vmem>>, vector<36x128xbf16>
    %c0_1 = arith.constant 0 : index
    %c0_2 = arith.constant 0 : index
    %1 = vector.load %arg1[%c0_1, %c0_2] : memref<2048x36xbf16, #tpu.memory_space<vmem>>, vector<2048x36xbf16>
    %cst = arith.constant dense<0.000000e+00> : vector<2048x128xf32>
    %2 = tpu.matmul %1, %0, %cst {dimension_numbers = #tpu.dot_dimension_numbers<[1], [0], [0], [1], [0, 0, 1, 1], [], []>} : vector<2048x36xbf16>, vector<36x128xbf16>, vector<2048x128xf32> -> vector<2048x128xf32>
    %cst_3 = arith.constant 0.000000e+00 : f32
    %3 = vector.broadcast %cst_3 : f32 to vector<2048x128xf32>
    %4 = arith.maximumf %2, %3 : vector<2048x128xf32>
    %5 = vector.shape_cast %4 : vector<2048x128xf32> to vector<8x256x128xf32>
    %cst_4 = arith.constant dense<0.000000e+00> : vector<8x128xf32>
    %6 = vector.multi_reduction <add>, %5, %cst_4 [1] : vector<8x256x128xf32> to vector<8x128xf32>
    %cst_5 = arith.constant 3.906250e-03 : f32
    %7 = vector.broadcast %cst_5 : f32 to vector<8x128xf32>
    %8 = arith.mulf %6, %7 : vector<8x128xf32>
    %9 = arith.truncf %8 : vector<8x128xf32> to vector<8x128xbf16>
    %c0_6 = arith.constant 0 : index
    %c0_7 = arith.constant 0 : index
    %10 = vector.load %arg3[%c0_6, %c0_7] : memref<8x128xbf16, #tpu.memory_space<vmem>>, vector<8x128xbf16>
    tpu.vector_store %arg3[%c0_6, %c0_7], %9 {strides = array<i32>} : memref<8x128xbf16, #tpu.memory_space<vmem>>, vector<8x128xbf16>,
    return
  }
  func.func @transform_0(%arg0: i32) -> (i32, i32) {
    %c0_i32 = arith.constant 0 : i32
    %c0_i32_0 = arith.constant 0 : i32
    return %arg0, %c0_i32 : i32, i32
  }
  func.func @transform_1(%arg0: i32) -> (i32, i32) {
    %c0_i32 = arith.constant 0 : i32
    %c0_i32_0 = arith.constant 0 : i32
    %c0_i32_1 = arith.constant 0 : i32
    return %c0_i32, %c0_i32_0 : i32, i32
  }
  func.func @transform_2(%arg0: i32) -> (i32, i32) {
    %c0_i32 = arith.constant 0 : i32
    %c0_i32_0 = arith.constant 0 : i32
    return %arg0, %c0_i32 : i32, i32
  }
}

</mosaic_0001>

<bundles_post_ra>
// kernel: tpu_custom_call.1
= control target key start
LH: loop header
LB: loop body
LE: loop exit
PB: predicated region body
PF: predicated region fallthrough
CT: control target
= control target key end

     0   :  { %vm1314_vm0 = vcmask 1041408   ;;  %vm929_vm1 = vcmask 293888   ;;  %s4399_s0 = inlined_call_operand.vmem [shape: bf16[2048,36], index: 0, kind: input, shape index: {}]   ;;  %s4400_s1 = inlined_call_operand.vmem [shape: bf16[36,128], index: 1, kind: input, shape index: {}]   ;;  %s4401_s2 = inlined_call_operand.hbm [shape: bf16[8,128], index: 2, kind: output, shape index: {}]  }
   0x1   :  { %v3683_v0 = vld [vmem:[%s4400_s1 + $0x10] ss:$0 sps:$4 sm:$0x33]   ;;  %v3684_v1 = vld [vmem:[%s4400_s1 + $0x8] sm:$0xff]   ;;  %v3685_v3 = vld [vmem:[%s4400_s1] sm:$0xff]  }
   0x2   :  { %3680 = vmatprep.subr.msk.bf16.mxu0 %vm1314_vm0, %v3683_v0  ;;  %3681 = vmatprep.subr.msk.bf16.mxu1 %vm1314_vm0, %v3683_v0  ;;  %v1316_v2 = vsel %vm1314_vm0, %v3683_v0, 0  ;;  %v3686_v4 = vld [vmem:[%s4399_s0] sm:$0xff]   ;;  %v3688_v6 = vld [vmem:[%s4399_s0 + $0x8] sm:$0xff]   ;;  %v3690_v8 = vld [vmem:[%s4399_s0 + $0x10] sm:$0xff]  }
   0x3   :  { %3413 = vmatpush3.bf16.msra.mxu0 %v1316_v2  ;;  %3677 = vmatpush3.bf16.msra.mxu1 %v1316_v2  ;;  %v3687_v5 = vld [vmem:[%s4399_s0 + $0x200] sm:$0xff]   ;;  %v3689_v7 = vld [vmem:[%s4399_s0 + $0x208] sm:$0xff]   ;;  %v3691_v9 = vld [vmem:[%s4399_s0 + $0x210] sm:$0xff]  }
   0x4   :  { %3414 = vmatprep.subr.bf16.mxu0 %v3684_v1  ;;  %3675 = vmatprep.subr.bf16.mxu1 %v3684_v1  ;;  %v3692_v10 = vld [vmem:[%s4399_s0 + $0x18] sm:$0xff]   ;;  %v3694_v12 = vld [vmem:[%s4399_s0 + $0x20] sm:$0xff]   ;;  %v3696_v14 = vld [vmem:[%s4399_s0 + $0x28] sm:$0xff]  }
   0x5   :  { %3418 = vmatprep.mubr.msk.bf16.mxu0 %vm929_vm1, %v3686_v4  ;;  %3546 = vmatprep.mubr.msk.bf16.mxu1 %vm929_vm1, %v3687_v5  ;;  %v3693_v11 = vld [vmem:[%s4399_s0 + $0x218] sm:$0xff]   ;;  %v3695_v13 = vld [vmem:[%s4399_s0 + $0x220] sm:$0xff]   ;;  %v3697_v15 = vld [vmem:[%s4399_s0 + $0x228] sm:$0xff]  }
   0x6   :  { %v3698_v16 = vld [vmem:[%s4399_s0 + $0x30] sm:$0xff]   ;;  %v3700_v18 = vld [vmem:[%s4399_s0 + $0x38] sm:$0xff]   ;;  %v3702_v20 = vld [vmem:[%s4399_s0 + $0x40] sm:$0xff]  }
   0x7   :  { %3415 = vmatpush3.bf16.msra.mxu0 %v3684_v1  ;;  %3678 = vmatpush3.bf16.msra.mxu1 %v3684_v1  ;;  %v3699_v17 = vld [vmem:[%s4399_s0 + $0x230] sm:$0xff]   ;;  %v3701_v19 = vld [vmem:[%s4399_s0 + $0x238] sm:$0xff]   ;;  %v3703_v21 = vld [vmem:[%s4399_s0 + $0x240] sm:$0xff]  }
   0x8   :  { %3416 = vmatprep.subr.bf16.mxu0 %v3685_v3  ;;  %3676 = vmatprep.subr.bf16.mxu1 %v3685_v3  ;;  %v3704_v22 = vld [vmem:[%s4399_s0 + $0x48] sm:$0xff]   ;;  %v3706_v24 = vld [vmem:[%s4399_s0 + $0x50] sm:$0xff]   ;;  %v3708_v26 = vld [vmem:[%s4399_s0 + $0x58] sm:$0xff]  }
   0x9   :  { %v3705_v23 = vld [vmem:[%s4399_s0 + $0x248] sm:$0xff]   ;;  %v3707_v25 = vld [vmem:[%s4399_s0 + $0x250] sm:$0xff]   ;;  %v3709_v27 = vld [vmem:[%s4399_s0 + $0x258] sm:$0xff]  }
   0xa   :  { %v3710_v28 = vld [vmem:[%s4399_s0 + $0x60] sm:$0xff]   ;;  %v3712_v30 = vld [vmem:[%s4399_s0 + $0x68] sm:$0xff]   ;;  %v3714_v32 = vld [vmem:[%s4399_s0 + $0x70] sm:$0xff]  }
   0xb   :  { %3417 = vmatpush3.bf16.msra.mxu0 %v3685_v3  ;;  %3679 = vmatpush3.bf16.msra.mxu1 %v3685_v3  ;;  %v3711_v29 = vld [vmem:[%s4399_s0 + $0x260] sm:$0xff]   ;;  %v3713_v31 = vld [vmem:[%s4399_s0 + $0x268] sm:$0xff]   ;;  %v3715_v33 = vld [vmem:[%s4399_s0 + $0x270] sm:$0xff]  }
   0xc   :  { %v3716_v34 = vld [vmem:[%s4399_s0 + $0x78] sm:$0xff]   ;;  %v3718_v36 = vld [vmem:[%s4399_s0 + $0x80] sm:$0xff]   ;;  %v3720_v38 = vld [vmem:[%s4399_s0 + $0x88] sm:$0xff]  }
   0xd   :  { %v3717_v35 = vld [vmem:[%s4399_s0 + $0x278] sm:$0xff]   ;;  %v3719_v37 = vld [vmem:[%s4399_s0 + $0x280] sm:$0xff]   ;;  %v3721_v39 = vld [vmem:[%s4399_s0 + $0x288] sm:$0xff]  }
   0xe   :  { %3419 = vmatmul.mubr.msk.bf16.vlgmr.msra.gmra.mxu0 %vm929_vm1, %v3688_v6  ;;  %3547 = vmatmul.mubr.msk.bf16.vlgmr.msra.gmra.mxu1 %vm929_vm1, %v3689_v7  ;;  %v3722_v40 = vld [vmem:[%s4399_s0 + $0x90] sm:$0xff]   ;;  %v3724_v42 = vld [vmem:[%s4399_s0 + $0x98] sm:$0xff]   ;;  %v3726_v44 = vld [vmem:[%s4399_s0 + $0xa0] sm:$0xff]  }
   0xf   :  { %3422 = vmatprep.mubr.msk.bf16.mxu0 %vm929_vm1, %v3690_v8  ;;  %3550 = vmatprep.mubr.msk.bf16.mxu1 %vm929_vm1, %v3691_v9  ;;  %v3723_v41 = vld [vmem:[%s4399_s0 + $0x290] sm:$0xff]   ;;  %v3725_v43 = vld [vmem:[%s4399_s0 + $0x298] sm:$0xff]   ;;  %v3727_v45 = vld [vmem:[%s4399_s0 + $0x2a0] sm:$0xff]  }
  0x10   :  { %v3728_v46 = vld [vmem:[%s4399_s0 + $0xa8] sm:$0xff]   ;;  %v3730_v48 = vld [vmem:[%s4399_s0 + $0xb0] sm:$0xff]   ;;  %v3732_v50 = vld [vmem:[%s4399_s0 + $0xb8] sm:$0xff]  }
  0x11   :  { %v3729_v47 = vld [vmem:[%s4399_s0 + $0x2a8] sm:$0xff]   ;;  %v3731_v49 = vld [vmem:[%s4399_s0 + $0x2b0] sm:$0xff]   ;;  %v3733_v51 = vld [vmem:[%s4399_s0 + $0x2b8] sm:$0xff]  }
  0x12   :  { %v3734_v52 = vld [vmem:[%s4399_s0 + $0xc0] sm:$0xff]   ;;  %v3736_v54 = vld [vmem:[%s4399_s0 + $0xc8] sm:$0xff]   ;;  %v3738_v56 = vld [vmem:[%s4399_s0 + $0xd0] sm:$0xff]  }
  0x13   :  { %v3735_v53 = vld [vmem:[%s4399_s0 + $0x2c0] sm:$0xff]   ;;  %v3737_v55 = vld [vmem:[%s4399_s0 + $0x2c8] sm:$0xff]   ;;  %v3739_v57 = vld [vmem:[%s4399_s0 + $0x2d0] sm:$0xff]  }
  0x14   :  { %v3740_v58 = vld [vmem:[%s4399_s0 + $0xd8] sm:$0xff]   ;;  %v3742_v60 = vld [vmem:[%s4399_s0 + $0xe0] sm:$0xff]   ;;  %v3744_v62 = vld [vmem:[%s4399_s0 + $0xe8] sm:$0xff]  }
  0x15   :  { %v3741_v59 = vld [vmem:[%s4399_s0 + $0x2d8] sm:$0xff]   ;;  %v3743_v61 = vld [vmem:[%s4399_s0 + $0x2e0] sm:$0xff]   ;;  %v3745_v63 = vld [vmem:[%s4399_s0 + $0x2e8] sm:$0xff]  }
  0x16   :  { %3423 = vmatmul.mubr.msk.bf16.gmra.mxu0 %vm929_vm1, %v3692_v10  ;;  %3551 = vmatmul.mubr.msk.bf16.gmra.mxu1 %vm929_vm1, %v3693_v11  ;;  %v3746_v0 = vld [vmem:[%s4399_s0 + $0xf0] sm:$0xff]  }
  0x17   :  { %3426 = vmatprep.mubr.msk.bf16.mxu0 %vm929_vm1, %v3694_v12  ;;  %3554 = vmatprep.mubr.msk.bf16.mxu1 %vm929_vm1, %v3695_v13  ;;  %v3747_v1 = vld [vmem:[%s4399_s0 + $0x2f0] sm:$0xff]  }
  0x1e   :  { %3427 = vmatmul.mubr.msk.bf16.gmra.mxu0 %vm929_vm1, %v3696_v14  ;;  %3555 = vmatmul.mubr.msk.bf16.gmra.mxu1 %vm929_vm1, %v3697_v15 }
  0x1f   :  { %3430 = vmatprep.mubr.msk.bf16.mxu0 %vm929_vm1, %v3698_v16  ;;  %3558 = vmatprep.mubr.msk.bf16.mxu1 %vm929_vm1, %v3699_v17 }
  0x26   :  { %3431 = vmatmul.mubr.msk.bf16.gmra.mxu0 %vm929_vm1, %v3700_v18  ;;  %3559 = vmatmul.mubr.msk.bf16.gmra.mxu1 %vm929_vm1, %v3701_v19 }
  0x27   :  { %3434 = vmatprep.mubr.msk.bf16.mxu0 %vm929_vm1, %v3702_v20  ;;  %3562 = vmatprep.mubr.msk.bf16.mxu1 %vm929_vm1, %v3703_v21 }
  0x2e   :  { %3435 = vmatmul.mubr.msk.bf16.gmra.mxu0 %vm929_vm1, %v3704_v22  ;;  %3563 = vmatmul.mubr.msk.bf16.gmra.mxu1 %vm929_vm1, %v3705_v23 }
  0x2f   :  { %3438 = vmatprep.mubr.msk.bf16.mxu0 %vm929_vm1, %v3706_v24  ;;  %3566 = vmatprep.mubr.msk.bf16.mxu1 %vm929_vm1, %v3707_v25 }
  0x36   :  { %3439 = vmatmul.mubr.msk.bf16.gmra.mxu0 %vm929_vm1, %v3708_v26  ;;  %3567 = vmatmul.mubr.msk.bf16.gmra.mxu1 %vm929_vm1, %v3709_v27 }
  0x37   :  { %3442 = vmatprep.mubr.msk.bf16.mxu0 %vm929_vm1, %v3710_v28  ;;  %3570 = vmatprep.mubr.msk.bf16.mxu1 %vm929_vm1, %v3711_v29 }
  0x3e   :  { %3443 = vmatmul.mubr.msk.bf16.gmra.mxu0 %vm929_vm1, %v3712_v30  ;;  %3571 = vmatmul.mubr.msk.bf16.gmra.mxu1 %vm929_vm1, %v3713_v31 }
  0x3f   :  { %3446 = vmatprep.mubr.msk.bf16.mxu0 %vm929_vm1, %v3714_v32  ;;  %3574 = vmatprep.mubr.msk.bf16.mxu1 %vm929_vm1, %v3715_v33 }
  0x46   :  { %3447 = vmatmul.mubr.msk.bf16.gmra.mxu0 %vm929_vm1, %v3716_v34  ;;  %3575 = vmatmul.mubr.msk.bf16.gmra.mxu1 %vm929_vm1, %v3717_v35 }
  0x47   :  { %3450 = vmatprep.mubr.msk.bf16.mxu0 %vm929_vm1, %v3718_v36  ;;  %3578 = vmatprep.mubr.msk.bf16.mxu1 %vm929_vm1, %v3719_v37 }
  0x4e   :  { %3451 = vmatmul.mubr.msk.bf16.gmra.mxu0 %vm929_vm1, %v3720_v38  ;;  %3579 = vmatmul.mubr.msk.bf16.gmra.mxu1 %vm929_vm1, %v3721_v39 }
  0x4f   :  { %3454 = vmatprep.mubr.msk.bf16.mxu0 %vm929_vm1, %v3722_v40  ;;  %3582 = vmatprep.mubr.msk.bf16.mxu1 %vm929_vm1, %v3723_v41 }
  0x56   :  { %3455 = vmatmul.mubr.msk.bf16.gmra.mxu0 %vm929_vm1, %v3724_v42  ;;  %3583 = vmatmul.mubr.msk.bf16.gmra.mxu1 %vm929_vm1, %v3725_v43 }
  0x57   :  { %3458 = vmatprep.mubr.msk.bf16.mxu0 %vm929_vm1, %v3726_v44  ;;  %3586 = vmatprep.mubr.msk.bf16.mxu1 %vm929_vm1, %v3727_v45 }
  0x5e   :  { %3459 = vmatmul.mubr.msk.bf16.gmra.mxu0 %vm929_vm1, %v3728_v46  ;;  %3587 = vmatmul.mubr.msk.bf16.gmra.mxu1 %vm929_vm1, %v3729_v47 }
  0x5f   :  { %3462 = vmatprep.mubr.msk.bf16.mxu0 %vm929_vm1, %v3730_v48  ;;  %3590 = vmatprep.mubr.msk.bf16.mxu1 %vm929_vm1, %v3731_v49 }
  0x66   :  { %3463 = vmatmul.mubr.msk.bf16.gmra.mxu0 %vm929_vm1, %v3732_v50  ;;  %3591 = vmatmul.mubr.msk.bf16.gmra.mxu1 %vm929_vm1, %v3733_v51 }
  0x67   :  { %3466 = vmatprep.mubr.msk.bf16.mxu0 %vm929_vm1, %v3734_v52  ;;  %3594 = vmatprep.mubr.msk.bf16.mxu1 %vm929_vm1, %v3735_v53 }
  0x6e   :  { %3467 = vmatmul.mubr.msk.bf16.gmra.mxu0 %vm929_vm1, %v3736_v54  ;;  %3595 = vmatmul.mubr.msk.bf16.gmra.mxu1 %vm929_vm1, %v3737_v55 }
  0x6f   :  { %3470 = vmatprep.mubr.msk.bf16.mxu0 %vm929_vm1, %v3738_v56  ;;  %3598 = vmatprep.mubr.msk.bf16.mxu1 %vm929_vm1, %v3739_v57 }
  0x76   :  { %3471 = vmatmul.mubr.msk.bf16.gmra.mxu0 %vm929_vm1, %v3740_v58  ;;  %3599 = vmatmul.mubr.msk.bf16.gmra.mxu1 %vm929_vm1, %v3741_v59 }
  0x77   :  { %3474 = vmatprep.mubr.msk.bf16.mxu0 %vm929_vm1, %v3742_v60  ;;  %3602 = vmatprep.mubr.msk.bf16.mxu1 %vm929_vm1, %v3743_v61 }
  0x7e   :  { %3475 = vmatmul.mubr.msk.bf16.gmra.mxu0 %vm929_vm1, %v3744_v62  ;;  %3603 = vmatmul.mubr.msk.bf16.gmra.mxu1 %vm929_vm1, %v3745_v63 }
  0x7f   :  { %3478 = vmatprep.mubr.msk.bf16.mxu0 %vm929_vm1, %v3746_v0  ;;  %3606 = vmatprep.mubr.msk.bf16.mxu1 %vm929_vm1, %v3747_v1 }
  0x80   :  { %7 = vsyncpa [#allocation3], 0  ;;  %v3748_v2 = vld [vmem:[%s4399_s0 + $0xf8] sm:$0xff]   ;;  %v3750_v4 = vld [vmem:[%s4399_s0 + $0x100] sm:$0xff]   ;;  %vm2975_vm2 = vcmask 1041409   ;;  %vm2977_vm3 = vcmask 1042434  }
  0x81   :  { %v3749_v3 = vld [vmem:[%s4399_s0 + $0x2f8] sm:$0xff]   ;;  %v3751_v5 = vld [vmem:[%s4399_s0 + $0x300] sm:$0xff]   ;;  %v3752_v6 = vld [vmem:[%s4399_s0 + $0x108] sm:$0xff]   ;;  %vm2979_vm4 = vcmask 1043459   ;;  %vm2981_vm5 = vcmask 1044484   ;;  %vm2983_vm6 = vcmask 1045509  }
  0x82   :  { %v3753_v7 = vld [vmem:[%s4399_s0 + $0x308] sm:$0xff]   ;;  %v3754_v8 = vld [vmem:[%s4399_s0 + $0x110] sm:$0xff]   ;;  %v3756_v10 = vld [vmem:[%s4399_s0 + $0x118] sm:$0xff]   ;;  %vm2985_vm7 = vcmask 1046534   ;;  %vm2987_vm8 = vcmask 1047559  }
  0x83   :  { %v3755_v9 = vld [vmem:[%s4399_s0 + $0x310] sm:$0xff]   ;;  %v3757_v11 = vld [vmem:[%s4399_s0 + $0x318] sm:$0xff]   ;;  %v3758_v12 = vld [vmem:[%s4399_s0 + $0x120] sm:$0xff]  }
  0x84   :  { %v3759_v13 = vld [vmem:[%s4399_s0 + $0x320] sm:$0xff]   ;;  %v3760_v14 = vld [vmem:[%s4399_s0 + $0x128] sm:$0xff]   ;;  %v3762_v16 = vld [vmem:[%s4399_s0 + $0x130] sm:$0xff]  }
  0x85   :  { %v3761_v15 = vld [vmem:[%s4399_s0 + $0x328] sm:$0xff]   ;;  %v3763_v17 = vld [vmem:[%s4399_s0 + $0x330] sm:$0xff]   ;;  %v3764_v18 = vld [vmem:[%s4399_s0 + $0x138] sm:$0xff]  }
  0x86   :  { %3479 = vmatmul.mubr.msk.bf16.gmra.mxu0 %vm929_vm1, %v3748_v2  ;;  %3607 = vmatmul.mubr.msk.bf16.gmra.mxu1 %vm929_vm1, %v3749_v3  ;;  %v3765_v19 = vld [vmem:[%s4399_s0 + $0x338] sm:$0xff]   ;;  %v3766_v20 = vld [vmem:[%s4399_s0 + $0x140] sm:$0xff]   ;;  %v3768_v22 = vld [vmem:[%s4399_s0 + $0x148] sm:$0xff]  }
  0x87   :  { %3482 = vmatprep.mubr.msk.bf16.mxu0 %vm929_vm1, %v3750_v4  ;;  %3610 = vmatprep.mubr.msk.bf16.mxu1 %vm929_vm1, %v3751_v5  ;;  %v3767_v21 = vld [vmem:[%s4399_s0 + $0x340] sm:$0xff]   ;;  %v3769_v23 = vld [vmem:[%s4399_s0 + $0x348] sm:$0xff]   ;;  %v3770_v24 = vld [vmem:[%s4399_s0 + $0x150] sm:$0xff]  }
  0x88   :  { %v3771_v25 = vld [vmem:[%s4399_s0 + $0x350] sm:$0xff]   ;;  %v3772_v26 = vld [vmem:[%s4399_s0 + $0x158] sm:$0xff]   ;;  %v3774_v28 = vld [vmem:[%s4399_s0 + $0x160] sm:$0xff]  }
  0x89   :  { %v3773_v27 = vld [vmem:[%s4399_s0 + $0x358] sm:$0xff]   ;;  %v3775_v29 = vld [vmem:[%s4399_s0 + $0x360] sm:$0xff]   ;;  %v3776_v30 = vld [vmem:[%s4399_s0 + $0x168] sm:$0xff]  }
  0x8a   :  { %v3777_v31 = vld [vmem:[%s4399_s0 + $0x368] sm:$0xff]   ;;  %v3778_v32 = vld [vmem:[%s4399_s0 + $0x170] sm:$0xff]   ;;  %v3780_v34 = vld [vmem:[%s4399_s0 + $0x178] sm:$0xff]  }
  0x8b   :  { %v3779_v33 = vld [vmem:[%s4399_s0 + $0x370] sm:$0xff]   ;;  %v3781_v35 = vld [vmem:[%s4399_s0 + $0x378] sm:$0xff]   ;;  %v3782_v36 = vld [vmem:[%s4399_s0 + $0x180] sm:$0xff]  }
  0x8c   :  { %v3783_v37 = vld [vmem:[%s4399_s0 + $0x380] sm:$0xff]   ;;  %v3784_v38 = vld [vmem:[%s4399_s0 + $0x188] sm:$0xff]   ;;  %v3786_v40 = vld [vmem:[%s4399_s0 + $0x190] sm:$0xff]  }
  0x8d   :  { %v3785_v39 = vld [vmem:[%s4399_s0 + $0x388] sm:$0xff]   ;;  %v3787_v41 = vld [vmem:[%s4399_s0 + $0x390] sm:$0xff]   ;;  %v3788_v48 = vld [vmem:[%s4399_s0 + $0x198] sm:$0xff]  }
  0x8e   :  { %3483 = vmatmul.mubr.msk.bf16.gmra.mxu0 %vm929_vm1, %v3752_v6  ;;  %3611 = vmatmul.mubr.msk.bf16.gmra.mxu1 %vm929_vm1, %v3753_v7  ;;  %v3789_v49 = vld [vmem:[%s4399_s0 + $0x398] sm:$0xff]   ;;  %v3790_v50 = vld [vmem:[%s4399_s0 + $0x1a0] sm:$0xff]  }
  0x8f   :  { %3486 = vmatprep.mubr.msk.bf16.mxu0 %vm929_vm1, %v3754_v8  ;;  %3614 = vmatprep.mubr.msk.bf16.mxu1 %vm929_vm1, %v3755_v9  ;;  %v3791_v51 = vld [vmem:[%s4399_s0 + $0x3a0] sm:$0xff]   ;;  %v3792_v9 = vld [vmem:[%s4399_s0 + $0x1a8] sm:$0xff]  }
  0x96   :  { %3487 = vmatmul.mubr.msk.bf16.gmra.mxu0 %vm929_vm1, %v3756_v10  ;;  %3615 = vmatmul.mubr.msk.bf16.gmra.mxu1 %vm929_vm1, %v3757_v11  ;;  %v3793_v10 = vld [vmem:[%s4399_s0 + $0x3a8] sm:$0xff]  }
  0x97   :  { %3490 = vmatprep.mubr.msk.bf16.mxu0 %vm929_vm1, %v3758_v12  ;;  %3618 = vmatprep.mubr.msk.bf16.mxu1 %vm929_vm1, %v3759_v13 }
  0x9e   :  { %3491 = vmatmul.mubr.msk.bf16.gmra.mxu0 %vm929_vm1, %v3760_v14  ;;  %3619 = vmatmul.mubr.msk.bf16.gmra.mxu1 %vm929_vm1, %v3761_v15  ;;  %v3794_v14 = vld [vmem:[%s4399_s0 + $0x1b0] sm:$0xff]  }
  0x9f   :  { %3494 = vmatprep.mubr.msk.bf16.mxu0 %vm929_vm1, %v3762_v16  ;;  %3622 = vmatprep.mubr.msk.bf16.mxu1 %vm929_vm1, %v3763_v17  ;;  %v3795_v15 = vld [vmem:[%s4399_s0 + $0x3b0] sm:$0xff]  }
  0xa6   :  { %3495 = vmatmul.mubr.msk.bf16.gmra.mxu0 %vm929_vm1, %v3764_v18  ;;  %3623 = vmatmul.mubr.msk.bf16.gmra.mxu1 %vm929_vm1, %v3765_v19 }
  0xa7   :  { %3498 = vmatprep.mubr.msk.bf16.mxu0 %vm929_vm1, %v3766_v20  ;;  %3626 = vmatprep.mubr.msk.bf16.mxu1 %vm929_vm1, %v3767_v21 }
  0xae   :  { %3499 = vmatmul.mubr.msk.bf16.gmra.mxu0 %vm929_vm1, %v3768_v22  ;;  %3627 = vmatmul.mubr.msk.bf16.gmra.mxu1 %vm929_vm1, %v3769_v23 }
  0xaf   :  { %3502 = vmatprep.mubr.msk.bf16.mxu0 %vm929_vm1, %v3770_v24  ;;  %3630 = vmatprep.mubr.msk.bf16.mxu1 %vm929_vm1, %v3771_v25 }
  0xb6   :  { %3503 = vmatmul.mubr.msk.bf16.gmra.mxu0 %vm929_vm1, %v3772_v26  ;;  %3631 = vmatmul.mubr.msk.bf16.gmra.mxu1 %vm929_vm1, %v3773_v27 }
  0xb7   :  { %3506 = vmatprep.mubr.msk.bf16.mxu0 %vm929_vm1, %v3774_v28  ;;  %3634 = vmatprep.mubr.msk.bf16.mxu1 %vm929_vm1, %v3775_v29 }
  0xbe   :  { %3507 = vmatmul.mubr.msk.bf16.gmra.mxu0 %vm929_vm1, %v3776_v30  ;;  %3635 = vmatmul.mubr.msk.bf16.gmra.mxu1 %vm929_vm1, %v3777_v31 }
  0xbf   :  { %3510 = vmatprep.mubr.msk.bf16.mxu0 %vm929_vm1, %v3778_v32  ;;  %3638 = vmatprep.mubr.msk.bf16.mxu1 %vm929_vm1, %v3779_v33 }
  0xc6   :  { %3511 = vmatmul.mubr.msk.bf16.gmra.mxu0 %vm929_vm1, %v3780_v34  ;;  %3639 = vmatmul.mubr.msk.bf16.gmra.mxu1 %vm929_vm1, %v3781_v35 }
  0xc7   :  { %3514 = vmatprep.mubr.msk.bf16.mxu0 %vm929_vm1, %v3782_v36  ;;  %3642 = vmatprep.mubr.msk.bf16.mxu1 %vm929_vm1, %v3783_v37  ;;  %v3796_v37 = vld [vmem:[%s4399_s0 + $0x1b8] sm:$0xff]  }
  0xce   :  { %v3420_v42 = vpop.f32.mrf.mxu0  ;;  %3515 = vmatmul.mubr.msk.bf16.gmra.mxu0 %vm929_vm1, %v3784_v38  ;;  %v3548_v43 = vpop.f32.mrf.mxu1  ;;  %3643 = vmatmul.mubr.msk.bf16.gmra.mxu1 %vm929_vm1, %v3785_v39  ;;  %v3797_v38 = vld [vmem:[%s4399_s0 + $0x3b8] sm:$0xff]  }
  0xcf   :  { %3518 = vmatprep.mubr.msk.bf16.mxu0 %vm929_vm1, %v3786_v40  ;;  %3646 = vmatprep.mubr.msk.bf16.mxu1 %vm929_vm1, %v3787_v41  ;;  %v2377_v60 = vmax.f32 %v3420_v42, 0.0  ;;  %v2505_v61 = vmax.f32 %v3548_v43, 0.0  ;;  %v3798_v42 = vld [vmem:[%s4399_s0 + $0x1c0] sm:$0xff]  }
  0xd0   :  { %v1352_v44 = vpop.f32.mrf.mxu0  ;;  %v1864_v45 = vpop.f32.mrf.mxu1  ;;  %v3799_v43 = vld [vmem:[%s4399_s0 + $0x3c0] sm:$0xff]  }
  0xd1   :  { %v2375_v54 = vmax.f32 %v1352_v44, 0.0  ;;  %v2503_v55 = vmax.f32 %v1864_v45, 0.0 }
  0xd2   :  { %v3421_v46 = vpop.f32.mrf.mxu0  ;;  %v3549_v47 = vpop.f32.mrf.mxu1 }
  0xd3   :  { %v2378_v0 = vmax.f32 %v3421_v46, 0.0  ;;  %v2506_v3 = vmax.f32 %v3549_v47, 0.0 }
  0xd4   :  { %v1355_v52 = vpop.f32.mrf.mxu0  ;;  %v1867_v53 = vpop.f32.mrf.mxu1 }
  0xd5   :  { %v2376_v56 = vmax.f32 %v1355_v52, 0.0  ;;  %v2504_v57 = vmax.f32 %v1867_v53, 0.0 }
  0xd6   :  { %v3424_v58 = vpop.f32.mrf.mxu0  ;;  %3519 = vmatmul.mubr.msk.bf16.gmra.mxu0 %vm929_vm1, %v3788_v48  ;;  %v3552_v59 = vpop.f32.mrf.mxu1  ;;  %3647 = vmatmul.mubr.msk.bf16.gmra.mxu1 %vm929_vm1, %v3789_v49 }
  0xd7   :  { %v2631_v62 = vadd.f32 %v2376_v56, %v2375_v54  ;;  %v2779_v63 = vadd.f32 %v2504_v57, %v2503_v55  ;;  %3522 = vmatprep.mubr.msk.bf16.mxu0 %vm929_vm1, %v3790_v50  ;;  %3650 = vmatprep.mubr.msk.bf16.mxu1 %vm929_vm1, %v3791_v51  ;;  %v2381_v24 = vmax.f32 %v3424_v58, 0.0  ;;  %v2509_v25 = vmax.f32 %v3552_v59, 0.0 }
  0xd8   :  { %v1368_v1 = vpop.f32.mrf.mxu0  ;;  %v1880_v2 = vpop.f32.mrf.mxu1 }
  0xd9   :  { %v2632_v4 = vadd.f32 %v2631_v62, %v2377_v60  ;;  %v2780_v5 = vadd.f32 %v2779_v63, %v2505_v61  ;;  %v2507_v6 = vmax.f32 %v1880_v2, 0.0  ;;  %v2379_v11 = vmax.f32 %v1368_v1, 0.0  ;;  %v3800_v1 = vld [vmem:[%s4399_s0 + $0x1c8] sm:$0xff]  }
  0xda   :  { %v3425_v7 = vpop.f32.mrf.mxu0  ;;  %v3553_v8 = vpop.f32.mrf.mxu1  ;;  %v3801_v2 = vld [vmem:[%s4399_s0 + $0x3c8] sm:$0xff]  }
  0xdb   :  { %v2633_v12 = vadd.f32 %v2632_v4, %v2378_v0  ;;  %v2781_v13 = vadd.f32 %v2780_v5, %v2506_v3  ;;  %v2382_v28 = vmax.f32 %v3425_v7, 0.0  ;;  %v2510_v31 = vmax.f32 %v3553_v8, 0.0  ;;  %v3803_v7 = vld [vmem:[%s4399_s0 + $0x3d0] sm:$0xff]  }
  0xdc   :  { %v1371_v16 = vpop.f32.mrf.mxu0  ;;  %v1883_v17 = vpop.f32.mrf.mxu1 }
  0xdd   :  { %v2634_v18 = vadd.f32 %v2633_v12, %v2379_v11  ;;  %v2782_v19 = vadd.f32 %v2781_v13, %v2507_v6  ;;  %v2380_v20 = vmax.f32 %v1371_v16, 0.0  ;;  %v2508_v21 = vmax.f32 %v1883_v17, 0.0  ;;  %v3802_v6 = vld [vmem:[%s4399_s0 + $0x1d0] sm:$0xff]  }
  0xde   :  { %v3428_v22 = vpop.f32.mrf.mxu0  ;;  %3523 = vmatmul.mubr.msk.bf16.gmra.mxu0 %vm929_vm1, %v3792_v9  ;;  %v3556_v23 = vpop.f32.mrf.mxu1  ;;  %3651 = vmatmul.mubr.msk.bf16.gmra.mxu1 %vm929_vm1, %v3793_v10 }
  0xdf   :  { %v2635_v26 = vadd.f32 %v2634_v18, %v2380_v20  ;;  %v2783_v27 = vadd.f32 %v2782_v19, %v2508_v21  ;;  %3526 = vmatprep.mubr.msk.bf16.mxu0 %vm929_vm1, %v3794_v14  ;;  %3654 = vmatprep.mubr.msk.bf16.mxu1 %vm929_vm1, %v3795_v15  ;;  %v2385_v52 = vmax.f32 %v3428_v22, 0.0  ;;  %v2513_v53 = vmax.f32 %v3556_v23, 0.0 }
  0xe0   :  { %v1384_v29 = vpop.f32.mrf.mxu0  ;;  %v1896_v30 = vpop.f32.mrf.mxu1 }
  0xe1   :  { %v2636_v32 = vadd.f32 %v2635_v26, %v2381_v24  ;;  %v2784_v33 = vadd.f32 %v2783_v27, %v2509_v25  ;;  %v2511_v34 = vmax.f32 %v1896_v30, 0.0  ;;  %v2383_v39 = vmax.f32 %v1384_v29, 0.0  ;;  %v3804_v29 = vld [vmem:[%s4399_s0 + $0x1d8] sm:$0xff]  }
  0xe2   :  { %v3429_v35 = vpop.f32.mrf.mxu0  ;;  %v3557_v36 = vpop.f32.mrf.mxu1  ;;  %v3805_v30 = vld [vmem:[%s4399_s0 + $0x3d8] sm:$0xff]  }
  0xe3   :  { %v2637_v40 = vadd.f32 %v2636_v32, %v2382_v28  ;;  %v2785_v41 = vadd.f32 %v2784_v33, %v2510_v31  ;;  %v2386_v56 = vmax.f32 %v3429_v35, 0.0  ;;  %v2514_v59 = vmax.f32 %v3557_v36, 0.0  ;;  %v3807_v35 = vld [vmem:[%s4399_s0 + $0x3e0] sm:$0xff]  }
  0xe4   :  { %v1387_v44 = vpop.f32.mrf.mxu0  ;;  %v1899_v45 = vpop.f32.mrf.mxu1 }
  0xe5   :  { %v2638_v46 = vadd.f32 %v2637_v40, %v2383_v39  ;;  %v2786_v47 = vadd.f32 %v2785_v41, %v2511_v34  ;;  %v2384_v48 = vmax.f32 %v1387_v44, 0.0  ;;  %v2512_v49 = vmax.f32 %v1899_v45, 0.0  ;;  %v3806_v34 = vld [vmem:[%s4399_s0 + $0x1e0] sm:$0xff]  }
  0xe6   :  { %v3432_v50 = vpop.f32.mrf.mxu0  ;;  %3527 = vmatmul.mubr.msk.bf16.gmra.mxu0 %vm929_vm1, %v3796_v37  ;;  %v3560_v51 = vpop.f32.mrf.mxu1  ;;  %3655 = vmatmul.mubr.msk.bf16.gmra.mxu1 %vm929_vm1, %v3797_v38 }
  0xe7   :  { %v2639_v54 = vadd.f32 %v2638_v46, %v2384_v48  ;;  %v2787_v55 = vadd.f32 %v2786_v47, %v2512_v49  ;;  %3530 = vmatprep.mubr.msk.bf16.mxu0 %vm929_vm1, %v3798_v42  ;;  %3658 = vmatprep.mubr.msk.bf16.mxu1 %vm929_vm1, %v3799_v43  ;;  %v2389_v16 = vmax.f32 %v3432_v50, 0.0  ;;  %v2517_v17 = vmax.f32 %v3560_v51, 0.0 }
  0xe8   :  { %v1400_v57 = vpop.f32.mrf.mxu0  ;;  %v1912_v58 = vpop.f32.mrf.mxu1 }
  0xe9   :  { %v2640_v60 = vadd.f32 %v2639_v54, %v2385_v52  ;;  %v2788_v61 = vadd.f32 %v2787_v55, %v2513_v53  ;;  %v2515_v62 = vmax.f32 %v1912_v58, 0.0  ;;  %v2387_v3 = vmax.f32 %v1400_v57, 0.0  ;;  %v3808_v57 = vld [vmem:[%s4399_s0 + $0x1e8] sm:$0xff]  }
  0xea   :  { %v3433_v63 = vpop.f32.mrf.mxu0  ;;  %v3561_v0 = vpop.f32.mrf.mxu1  ;;  %v3809_v58 = vld [vmem:[%s4399_s0 + $0x3e8] sm:$0xff]  }
  0xeb   :  { %v2641_v4 = vadd.f32 %v2640_v60, %v2386_v56  ;;  %v2789_v5 = vadd.f32 %v2788_v61, %v2514_v59  ;;  %v2390_v20 = vmax.f32 %v3433_v63, 0.0  ;;  %v2518_v23 = vmax.f32 %v3561_v0, 0.0  ;;  %v3811_v63 = vld [vmem:[%s4399_s0 + $0x3f0] sm:$0xff]  }
  0xec   :  { %v1403_v8 = vpop.f32.mrf.mxu0  ;;  %v1915_v9 = vpop.f32.mrf.mxu1 }
  0xed   :  { %v2642_v10 = vadd.f32 %v2641_v4, %v2387_v3  ;;  %v2790_v11 = vadd.f32 %v2789_v5, %v2515_v62  ;;  %v2388_v12 = vmax.f32 %v1403_v8, 0.0  ;;  %v2516_v13 = vmax.f32 %v1915_v9, 0.0  ;;  %v3810_v62 = vld [vmem:[%s4399_s0 + $0x1f0] sm:$0xff]  }
  0xee   :  { %v3436_v14 = vpop.f32.mrf.mxu0  ;;  %3531 = vmatmul.mubr.msk.bf16.gmra.mxu0 %vm929_vm1, %v3800_v1  ;;  %v3564_v15 = vpop.f32.mrf.mxu1  ;;  %3659 = vmatmul.mubr.msk.bf16.gmra.mxu1 %vm929_vm1, %v3801_v2 }
  0xef   :  { %v2643_v18 = vadd.f32 %v2642_v10, %v2388_v12  ;;  %v2791_v19 = vadd.f32 %v2790_v11, %v2516_v13  ;;  %3534 = vmatprep.mubr.msk.bf16.mxu0 %vm929_vm1, %v3802_v6  ;;  %3662 = vmatprep.mubr.msk.bf16.mxu1 %vm929_vm1, %v3803_v7  ;;  %v2393_v44 = vmax.f32 %v3436_v14, 0.0  ;;  %v2521_v45 = vmax.f32 %v3564_v15, 0.0 }
  0xf0   :  { %v1416_v21 = vpop.f32.mrf.mxu0  ;;  %v1928_v22 = vpop.f32.mrf.mxu1 }
  0xf1   :  { %v2644_v24 = vadd.f32 %v2643_v18, %v2389_v16  ;;  %v2792_v25 = vadd.f32 %v2791_v19, %v2517_v17  ;;  %v2519_v26 = vmax.f32 %v1928_v22, 0.0  ;;  %v2391_v31 = vmax.f32 %v1416_v21, 0.0  ;;  %v3812_v21 = vld [vmem:[%s4399_s0 + $0x1f8] sm:$0xff]  }
  0xf2   :  { %v3437_v27 = vpop.f32.mrf.mxu0  ;;  %v3565_v28 = vpop.f32.mrf.mxu1  ;;  %v3813_v22 = vld [vmem:[%s4399_s0 + $0x3f8] sm:$0xff]   ;;  %s3836_s0 = smov [#allocation2]  }
  0xf3   :  { %v2645_v32 = vadd.f32 %v2644_v24, %v2390_v20  ;;  %v2793_v33 = vadd.f32 %v2792_v25, %v2518_v23  ;;  %v2394_v48 = vmax.f32 %v3437_v27, 0.0  ;;  %v2522_v51 = vmax.f32 %v3565_v28, 0.0  ;;  %s2998_s10 = sshll.u32 %s3836_s0, 4  ;;  %s2999_s10 = int_to_ptr.vmem [resolvable:$true] %s2998_s10 }
  0xf4   :  { %v1419_v36 = vpop.f32.mrf.mxu0  ;;  %v1931_v37 = vpop.f32.mrf.mxu1  ;;  %s3814_s11 = scalar_lea.vmem %s2999_s10, 64  ;;  %p3819_p1 = scmp.lt.s32.totalorder %s2999_s10, %s2999_s10 }
  0xf5   :  { %v2646_v38 = vadd.f32 %v2645_v32, %v2391_v31  ;;  %v2794_v39 = vadd.f32 %v2793_v33, %v2519_v26  ;;  %v2392_v40 = vmax.f32 %v1419_v36, 0.0  ;;  %v2520_v41 = vmax.f32 %v1931_v37, 0.0  ;;  %p3815_p0 = scmp.ne.s32.totalorder %s2999_s10, %s3814_s11  ;;  %p3820_p2 = scmp.lt.s32.totalorder %s3814_s11, %s3814_s11 }
  0xf6   :  { %v3440_v42 = vpop.f32.mrf.mxu0  ;;  %3535 = vmatmul.mubr.msk.bf16.gmra.mxu0 %vm929_vm1, %v3804_v29  ;;  %v3568_v43 = vpop.f32.mrf.mxu1  ;;  %3663 = vmatmul.mubr.msk.bf16.gmra.mxu1 %vm929_vm1, %v3805_v30 }
  0xf7   :  { %v2647_v46 = vadd.f32 %v2646_v38, %v2392_v40  ;;  %v2795_v47 = vadd.f32 %v2794_v39, %v2520_v41  ;;  %3538 = vmatprep.mubr.msk.bf16.mxu0 %vm929_vm1, %v3806_v34  ;;  %3666 = vmatprep.mubr.msk.bf16.mxu1 %vm929_vm1, %v3807_v35  ;;  %v2397_v8 = vmax.f32 %v3440_v42, 0.0  ;;  %v2525_v9 = vmax.f32 %v3568_v43, 0.0  ;;  %p3821_p3 = por %p3820_p2, %p3819_p1 }
  0xf8   :  { %v1432_v49 = vpop.f32.mrf.mxu0  ;;  %v1944_v50 = vpop.f32.mrf.mxu1 }
  0xf9   :  { %v2648_v52 = vadd.f32 %v2647_v46, %v2393_v44  ;;  %v2796_v53 = vadd.f32 %v2795_v47, %v2521_v45  ;;  %v2523_v54 = vmax.f32 %v1944_v50, 0.0  ;;  %v2395_v59 = vmax.f32 %v1432_v49, 0.0  ;;  %p3822_p4 = pnand %p3821_p3, %p3815_p0 }
  0xfa   :  { %v3441_v55 = vpop.f32.mrf.mxu0  ;;  %v3569_v56 = vpop.f32.mrf.mxu1 }
  0xfb   :  { %v2649_v60 = vadd.f32 %v2648_v52, %v2394_v48  ;;  %v2797_v61 = vadd.f32 %v2796_v53, %v2522_v51  ;;  %v2398_v12 = vmax.f32 %v3441_v55, 0.0  ;;  %v2526_v15 = vmax.f32 %v3569_v56, 0.0 }
  0xfc   :  { %v1435_v0 = vpop.f32.mrf.mxu0  ;;  %v1947_v1 = vpop.f32.mrf.mxu1 }
  0xfd   :  { %v2650_v2 = vadd.f32 %v2649_v60, %v2395_v59  ;;  %v2798_v3 = vadd.f32 %v2797_v61, %v2523_v54  ;;  %v2396_v4 = vmax.f32 %v1435_v0, 0.0  ;;  %v2524_v5 = vmax.f32 %v1947_v1, 0.0 }
  0xfe   :  { %v3444_v6 = vpop.f32.mrf.mxu0  ;;  %3539 = vmatmul.mubr.msk.bf16.gmra.mxu0 %vm929_vm1, %v3808_v57  ;;  %v3572_v7 = vpop.f32.mrf.mxu1  ;;  %3667 = vmatmul.mubr.msk.bf16.gmra.mxu1 %vm929_vm1, %v3809_v58 }
  0xff   :  { %v2651_v10 = vadd.f32 %v2650_v2, %v2396_v4  ;;  %v2799_v11 = vadd.f32 %v2798_v3, %v2524_v5  ;;  %3542 = vmatprep.mubr.msk.bf16.mxu0 %vm929_vm1, %v3810_v62  ;;  %3670 = vmatprep.mubr.msk.bf16.mxu1 %vm929_vm1, %v3811_v63  ;;  %v2401_v34 = vmax.f32 %v3444_v6, 0.0  ;;  %v2529_v35 = vmax.f32 %v3572_v7, 0.0 }
 0x100   :  { %v1448_v13 = vpop.f32.mrf.mxu0  ;;  %v1960_v14 = vpop.f32.mrf.mxu1 }
 0x101   :  { %v2652_v16 = vadd.f32 %v2651_v10, %v2397_v8  ;;  %v2800_v17 = vadd.f32 %v2799_v11, %v2525_v9  ;;  %v2527_v18 = vmax.f32 %v1960_v14, 0.0  ;;  %v2399_v23 = vmax.f32 %v1448_v13, 0.0 }
 0x102   :  { %v3445_v19 = vpop.f32.mrf.mxu0  ;;  %v3573_v20 = vpop.f32.mrf.mxu1 }
 0x103   :  { %v2653_v24 = vadd.f32 %v2652_v16, %v2398_v12  ;;  %v2801_v25 = vadd.f32 %v2800_v17, %v2526_v15  ;;  %v2402_v38 = vmax.f32 %v3445_v19, 0.0  ;;  %v2530_v41 = vmax.f32 %v3573_v20, 0.0 }
 0x104   :  { %v1451_v26 = vpop.f32.mrf.mxu0  ;;  %v1963_v27 = vpop.f32.mrf.mxu1 }
 0x105   :  { %v2654_v28 = vadd.f32 %v2653_v24, %v2399_v23  ;;  %v2802_v29 = vadd.f32 %v2801_v25, %v2527_v18  ;;  %v2400_v30 = vmax.f32 %v1451_v26, 0.0  ;;  %v2528_v31 = vmax.f32 %v1963_v27, 0.0 }
 0x106   :  { %v3448_v32 = vpop.f32.mrf.mxu0  ;;  %3543 = vmatmul.mubr.msk.bf16.gmra.mxu0 %vm929_vm1, %v3812_v21  ;;  %v3576_v33 = vpop.f32.mrf.mxu1  ;;  %3671 = vmatmul.mubr.msk.bf16.gmra.mxu1 %vm929_vm1, %v3813_v22 }
 0x107   :  { %v2655_v36 = vadd.f32 %v2654_v28, %v2400_v30  ;;  %v2803_v37 = vadd.f32 %v2802_v29, %v2528_v31  ;;  %v2405_v58 = vmax.f32 %v3448_v32, 0.0  ;;  %v2533_v59 = vmax.f32 %v3576_v33, 0.0 }
 0x108   :  { %v1464_v39 = vpop.f32.mrf.mxu0  ;;  %v1976_v40 = vpop.f32.mrf.mxu1 }
 0x109   :  { %v2656_v42 = vadd.f32 %v2655_v36, %v2401_v34  ;;  %v2804_v43 = vadd.f32 %v2803_v37, %v2529_v35  ;;  %v2531_v44 = vmax.f32 %v1976_v40, 0.0  ;;  %v2403_v47 = vmax.f32 %v1464_v39, 0.0 }
 0x10a   :  { %v3449_v45 = vpop.f32.mrf.mxu0  ;;  %v3577_v46 = vpop.f32.mrf.mxu1 }
 0x10b   :  { %v2657_v48 = vadd.f32 %v2656_v42, %v2402_v38  ;;  %v2805_v49 = vadd.f32 %v2804_v43, %v2530_v41  ;;  %v2406_v0 = vmax.f32 %v3449_v45, 0.0  ;;  %v2534_v1 = vmax.f32 %v3577_v46, 0.0 }
 0x10c   :  { %v1467_v50 = vpop.f32.mrf.mxu0  ;;  %v1979_v51 = vpop.f32.mrf.mxu1 }
 0x10d   :  { %v2658_v52 = vadd.f32 %v2657_v48, %v2403_v47  ;;  %v2806_v53 = vadd.f32 %v2805_v49, %v2531_v44  ;;  %v2404_v54 = vmax.f32 %v1467_v50, 0.0  ;;  %v2532_v55 = vmax.f32 %v1979_v51, 0.0 }
 0x10e   :  { %v3452_v56 = vpop.f32.mrf.mxu0  ;;  %v3580_v57 = vpop.f32.mrf.mxu1 }
 0x10f   :  { %v2659_v60 = vadd.f32 %v2658_v52, %v2404_v54  ;;  %v2807_v61 = vadd.f32 %v2806_v53, %v2532_v55  ;;  %v2409_v16 = vmax.f32 %v3452_v56, 0.0  ;;  %v2537_v17 = vmax.f32 %v3580_v57, 0.0 }
 0x110   :  { %v1480_v62 = vpop.f32.mrf.mxu0  ;;  %v1992_v63 = vpop.f32.mrf.mxu1 }
 0x111   :  { %v2660_v2 = vadd.f32 %v2659_v60, %v2405_v58  ;;  %v2808_v3 = vadd.f32 %v2807_v61, %v2533_v59  ;;  %v2407_v10 = vmax.f32 %v1480_v62, 0.0  ;;  %v2535_v11 = vmax.f32 %v1992_v63, 0.0 }
 0x112   :  { %v3453_v4 = vpop.f32.mrf.mxu0  ;;  %v3581_v5 = vpop.f32.mrf.mxu1 }
 0x113   :  { %v4373_v6 = vadd.f32 %v2660_v2, %v2406_v0  ;;  %v4375_v7 = vadd.f32 %v2808_v3, %v2534_v1  ;;  %v2410_v22 = vmax.f32 %v3453_v4, 0.0  ;;  %v2538_v23 = vmax.f32 %v3581_v5, 0.0 }
 0x114   :  { %v1483_v8 = vpop.f32.mrf.mxu0  ;;  %v1995_v9 = vpop.f32.mrf.mxu1 }
 0x115   :  { %v2408_v12 = vmax.f32 %v1483_v8, 0.0  ;;  %v2536_v13 = vmax.f32 %v1995_v9, 0.0 }
 0x116   :  { %v3456_v14 = vpop.f32.mrf.mxu0  ;;  %v3584_v15 = vpop.f32.mrf.mxu1 }
 0x117   :  { %v2668_v18 = vadd.f32 %v2408_v12, %v2407_v10  ;;  %v2816_v19 = vadd.f32 %v2536_v13, %v2535_v11  ;;  %v2413_v40 = vmax.f32 %v3456_v14, 0.0  ;;  %v2541_v41 = vmax.f32 %v3584_v15, 0.0 }
 0x118   :  { %v1496_v20 = vpop.f32.mrf.mxu0  ;;  %v2008_v21 = vpop.f32.mrf.mxu1 }
 0x119   :  { %v2669_v24 = vadd.f32 %v2668_v18, %v2409_v16  ;;  %v2817_v25 = vadd.f32 %v2816_v19, %v2537_v17  ;;  %v2539_v26 = vmax.f32 %v2008_v21, 0.0  ;;  %v2411_v29 = vmax.f32 %v1496_v20, 0.0 }
 0x11a   :  { %v3457_v27 = vpop.f32.mrf.mxu0  ;;  %v3585_v28 = vpop.f32.mrf.mxu1 }
 0x11b   :  { %v2670_v30 = vadd.f32 %v2669_v24, %v2410_v22  ;;  %v2818_v31 = vadd.f32 %v2817_v25, %v2538_v23  ;;  %v2414_v46 = vmax.f32 %v3457_v27, 0.0  ;;  %v2542_v47 = vmax.f32 %v3585_v28, 0.0 }
 0x11c   :  { %v1499_v32 = vpop.f32.mrf.mxu0  ;;  %v2011_v33 = vpop.f32.mrf.mxu1 }
 0x11d   :  { %v2671_v34 = vadd.f32 %v2670_v30, %v2411_v29  ;;  %v2819_v35 = vadd.f32 %v2818_v31, %v2539_v26  ;;  %v2412_v36 = vmax.f32 %v1499_v32, 0.0  ;;  %v2540_v37 = vmax.f32 %v2011_v33, 0.0 }
 0x11e   :  { %v3460_v38 = vpop.f32.mrf.mxu0  ;;  %v3588_v39 = vpop.f32.mrf.mxu1 }
 0x11f   :  { %v2672_v42 = vadd.f32 %v2671_v34, %v2412_v36  ;;  %v2820_v43 = vadd.f32 %v2819_v35, %v2540_v37  ;;  %v2417_v0 = vmax.f32 %v3460_v38, 0.0  ;;  %v2545_v1 = vmax.f32 %v3588_v39, 0.0 }
 0x120   :  { %v1512_v44 = vpop.f32.mrf.mxu0  ;;  %v2024_v45 = vpop.f32.mrf.mxu1 }
 0x121   :  { %v2673_v48 = vadd.f32 %v2672_v42, %v2413_v40  ;;  %v2821_v49 = vadd.f32 %v2820_v43, %v2541_v41  ;;  %v2543_v50 = vmax.f32 %v2024_v45, 0.0  ;;  %v2415_v53 = vmax.f32 %v1512_v44, 0.0 }
 0x122   :  { %v3461_v51 = vpop.f32.mrf.mxu0  ;;  %v3589_v52 = vpop.f32.mrf.mxu1 }
 0x123   :  { %v2674_v54 = vadd.f32 %v2673_v48, %v2414_v46  ;;  %v2822_v55 = vadd.f32 %v2821_v49, %v2542_v47  ;;  %v2418_v8 = vmax.f32 %v3461_v51, 0.0  ;;  %v2546_v9 = vmax.f32 %v3589_v52, 0.0 }
 0x124   :  { %v1515_v56 = vpop.f32.mrf.mxu0  ;;  %v2027_v57 = vpop.f32.mrf.mxu1 }
 0x125   :  { %v2416_v58 = vmax.f32 %v1515_v56, 0.0  ;;  %v2544_v59 = vmax.f32 %v2027_v57, 0.0  ;;  %v2675_v60 = vadd.f32 %v2674_v54, %v2415_v53  ;;  %v2823_v61 = vadd.f32 %v2822_v55, %v2543_v50 }
 0x126   :  { %v3464_v62 = vpop.f32.mrf.mxu0  ;;  %v3592_v63 = vpop.f32.mrf.mxu1 }
 0x127   :  { %v2676_v2 = vadd.f32 %v2675_v60, %v2416_v58  ;;  %v2824_v3 = vadd.f32 %v2823_v61, %v2544_v59  ;;  %v2421_v26 = vmax.f32 %v3464_v62, 0.0  ;;  %v2549_v27 = vmax.f32 %v3592_v63, 0.0 }
 0x128   :  { %v1528_v4 = vpop.f32.mrf.mxu0  ;;  %v2040_v5 = vpop.f32.mrf.mxu1 }
 0x129   :  { %v2677_v10 = vadd.f32 %v2676_v2, %v2417_v0  ;;  %v2825_v11 = vadd.f32 %v2824_v3, %v2545_v1  ;;  %v2547_v12 = vmax.f32 %v2040_v5, 0.0  ;;  %v2419_v15 = vmax.f32 %v1528_v4, 0.0 }
 0x12a   :  { %v3465_v13 = vpop.f32.mrf.mxu0  ;;  %v3593_v14 = vpop.f32.mrf.mxu1 }
 0x12b   :  { %v2678_v16 = vadd.f32 %v2677_v10, %v2418_v8  ;;  %v2826_v17 = vadd.f32 %v2825_v11, %v2546_v9  ;;  %v2422_v32 = vmax.f32 %v3465_v13, 0.0  ;;  %v2550_v33 = vmax.f32 %v3593_v14, 0.0 }
 0x12c   :  { %v1531_v18 = vpop.f32.mrf.mxu0  ;;  %v2043_v19 = vpop.f32.mrf.mxu1 }
 0x12d   :  { %v2420_v20 = vmax.f32 %v1531_v18, 0.0  ;;  %v2548_v21 = vmax.f32 %v2043_v19, 0.0  ;;  %v2679_v22 = vadd.f32 %v2678_v16, %v2419_v15  ;;  %v2827_v23 = vadd.f32 %v2826_v17, %v2547_v12 }
 0x12e   :  { %v3468_v24 = vpop.f32.mrf.mxu0  ;;  %v3596_v25 = vpop.f32.mrf.mxu1 }
 0x12f   :  { %v2680_v28 = vadd.f32 %v2679_v22, %v2420_v20  ;;  %v2828_v29 = vadd.f32 %v2827_v23, %v2548_v21  ;;  %v2425_v50 = vmax.f32 %v3468_v24, 0.0  ;;  %v2553_v51 = vmax.f32 %v3596_v25, 0.0 }
 0x130   :  { %v1544_v30 = vpop.f32.mrf.mxu0  ;;  %v2056_v31 = vpop.f32.mrf.mxu1 }
 0x131   :  { %v2681_v34 = vadd.f32 %v2680_v28, %v2421_v26  ;;  %v2829_v35 = vadd.f32 %v2828_v29, %v2549_v27  ;;  %v2551_v36 = vmax.f32 %v2056_v31, 0.0  ;;  %v2423_v39 = vmax.f32 %v1544_v30, 0.0 }
 0x132   :  { %v3469_v37 = vpop.f32.mrf.mxu0  ;;  %v3597_v38 = vpop.f32.mrf.mxu1  ;;  %v2662_v30 = vrot.slane %v4373_v6, 4 }
 0x133   :  { %v2682_v40 = vadd.f32 %v2681_v34, %v2422_v32  ;;  %v2830_v41 = vadd.f32 %v2829_v35, %v2550_v33  ;;  %v2426_v56 = vmax.f32 %v3469_v37, 0.0  ;;  %v2554_v57 = vmax.f32 %v3597_v38, 0.0 }
 0x134   :  { %v1547_v42 = vpop.f32.mrf.mxu0  ;;  %v2059_v43 = vpop.f32.mrf.mxu1 }
 0x135   :  { %v2424_v44 = vmax.f32 %v1547_v42, 0.0  ;;  %v2552_v45 = vmax.f32 %v2059_v43, 0.0  ;;  %v2683_v46 = vadd.f32 %v2682_v40, %v2423_v39  ;;  %v2831_v47 = vadd.f32 %v2830_v41, %v2551_v36 }
 0x136   :  { %v3472_v48 = vpop.f32.mrf.mxu0  ;;  %v3600_v49 = vpop.f32.mrf.mxu1  ;;  %v2663_v43 = vadd.f32 %v2662_v30, %v4373_v6 }
 0x137   :  { %v2684_v52 = vadd.f32 %v2683_v46, %v2424_v44  ;;  %v2832_v53 = vadd.f32 %v2831_v47, %v2552_v45  ;;  %v2429_v12 = vmax.f32 %v3472_v48, 0.0  ;;  %v2557_v13 = vmax.f32 %v3600_v49, 0.0 }
 0x138   :  { %v1560_v54 = vpop.f32.mrf.mxu0  ;;  %v2072_v55 = vpop.f32.mrf.mxu1 }
 0x139   :  { %v2685_v58 = vadd.f32 %v2684_v52, %v2425_v50  ;;  %v2833_v59 = vadd.f32 %v2832_v53, %v2553_v51  ;;  %v2555_v60 = vmax.f32 %v2072_v55, 0.0  ;;  %v2427_v63 = vmax.f32 %v1560_v54, 0.0 }
 0x13a   :  { %v3473_v61 = vpop.f32.mrf.mxu0  ;;  %v3601_v62 = vpop.f32.mrf.mxu1 }
 0x13b   :  { %v2686_v0 = vadd.f32 %v2685_v58, %v2426_v56  ;;  %v2834_v1 = vadd.f32 %v2833_v59, %v2554_v57  ;;  %v2430_v18 = vmax.f32 %v3473_v61, 0.0  ;;  %v2558_v19 = vmax.f32 %v3601_v62, 0.0 }
 0x13c   :  { %v1563_v2 = vpop.f32.mrf.mxu0  ;;  %v2075_v3 = vpop.f32.mrf.mxu1  ;;  %v2664_v56 = vrot.slane %v2663_v43, 2 }
 0x13d   :  { %v2428_v4 = vmax.f32 %v1563_v2, 0.0  ;;  %v2556_v5 = vmax.f32 %v2075_v3, 0.0  ;;  %v2687_v8 = vadd.f32 %v2686_v0, %v2427_v63  ;;  %v2835_v9 = vadd.f32 %v2834_v1, %v2555_v60 }
 0x13e   :  { %v3476_v10 = vpop.f32.mrf.mxu0  ;;  %v3604_v11 = vpop.f32.mrf.mxu1 }
 0x13f   :  { %v2688_v14 = vadd.f32 %v2687_v8, %v2428_v4  ;;  %v2836_v15 = vadd.f32 %v2835_v9, %v2556_v5  ;;  %v2433_v37 = vmax.f32 %v3476_v10, 0.0  ;;  %v2561_v38 = vmax.f32 %v3604_v11, 0.0 }
 0x140   :  { %v1576_v16 = vpop.f32.mrf.mxu0  ;;  %v2088_v17 = vpop.f32.mrf.mxu1  ;;  %v2665_v4 = vadd.f32 %v2664_v56, %v2663_v43 }
 0x141   :  { %v2689_v20 = vadd.f32 %v2688_v14, %v2429_v12  ;;  %v2837_v21 = vadd.f32 %v2836_v15, %v2557_v13  ;;  %v2559_v22 = vmax.f32 %v2088_v17, 0.0  ;;  %v2431_v25 = vmax.f32 %v1576_v16, 0.0 }
 0x142   :  { %v3477_v23 = vpop.f32.mrf.mxu0  ;;  %v3605_v24 = vpop.f32.mrf.mxu1 }
 0x143   :  { %v2690_v26 = vadd.f32 %v2689_v20, %v2430_v18  ;;  %v2838_v27 = vadd.f32 %v2837_v21, %v2558_v19  ;;  %v2434_v44 = vmax.f32 %v3477_v23, 0.0  ;;  %v2562_v45 = vmax.f32 %v3605_v24, 0.0 }
 0x144   :  { %v1579_v28 = vpop.f32.mrf.mxu0  ;;  %v2091_v29 = vpop.f32.mrf.mxu1  ;;  %v2666_v21 = vrot.slane %v2665_v4, 1 }
 0x145   :  { %v2432_v31 = vmax.f32 %v1579_v28, 0.0  ;;  %v2560_v32 = vmax.f32 %v2091_v29, 0.0  ;;  %v2691_v33 = vadd.f32 %v2690_v26, %v2431_v25  ;;  %v2839_v34 = vadd.f32 %v2838_v27, %v2559_v22 }
 0x146   :  { %v3480_v35 = vpop.f32.mrf.mxu0  ;;  %v3608_v36 = vpop.f32.mrf.mxu1 }
 0x147   :  { %v2692_v39 = vadd.f32 %v2691_v33, %v2432_v31  ;;  %v2840_v40 = vadd.f32 %v2839_v34, %v2560_v32  ;;  %v2437_v6 = vmax.f32 %v3480_v35, 0.0  ;;  %v2565_v63 = vmax.f32 %v3608_v36, 0.0 }
 0x148   :  { %v1592_v41 = vpop.f32.mrf.mxu0  ;;  %v2104_v42 = vpop.f32.mrf.mxu1 }
 0x149   :  { %v2693_v46 = vadd.f32 %v2692_v39, %v2433_v37  ;;  %v2841_v47 = vadd.f32 %v2840_v40, %v2561_v38  ;;  %v2563_v48 = vmax.f32 %v2104_v42, 0.0  ;;  %v2435_v51 = vmax.f32 %v1592_v41, 0.0 }
 0x14a   :  { %v3481_v49 = vpop.f32.mrf.mxu0  ;;  %v3609_v50 = vpop.f32.mrf.mxu1  ;;  %v2667_v37 = vadd.f32 %v2666_v21, %v2665_v4 }
 0x14b   :  { %v2694_v52 = vadd.f32 %v2693_v46, %v2434_v44  ;;  %v2842_v53 = vadd.f32 %v2841_v47, %v2562_v45  ;;  %v2438_v5 = vmax.f32 %v3481_v49, 0.0  ;;  %v2566_v8 = vmax.f32 %v3609_v50, 0.0 }
 0x14c   :  { %v1595_v54 = vpop.f32.mrf.mxu0  ;;  %v2107_v55 = vpop.f32.mrf.mxu1 }
 0x14d   :  { %v2436_v57 = vmax.f32 %v1595_v54, 0.0  ;;  %v2564_v58 = vmax.f32 %v2107_v55, 0.0  ;;  %v2695_v59 = vadd.f32 %v2694_v52, %v2435_v51  ;;  %v2843_v60 = vadd.f32 %v2842_v53, %v2563_v48 }
 0x14e   :  { %v3484_v61 = vpop.f32.mrf.mxu0  ;;  %v3612_v62 = vpop.f32.mrf.mxu1  ;;  %v2927_v51 = vmul.f32 0.00390625, %v2667_v37 }
 0x14f   :  { %v2696_v0 = vadd.f32 %v2695_v59, %v2436_v57  ;;  %v2844_v1 = vadd.f32 %v2843_v60, %v2564_v58  ;;  %v2441_v25 = vmax.f32 %v3484_v61, 0.0  ;;  %v2569_v26 = vmax.f32 %v3612_v62, 0.0 }
 0x150   :  { %v1608_v2 = vpop.f32.mrf.mxu0  ;;  %v2120_v3 = vpop.f32.mrf.mxu1 }
 0x151   :  { %v2697_v9 = vadd.f32 %v2696_v0, %v2437_v6  ;;  %v2845_v10 = vadd.f32 %v2844_v1, %v2565_v63  ;;  %v2439_v17 = vmax.f32 %v1608_v2, 0.0  ;;  %v2567_v18 = vmax.f32 %v2120_v3, 0.0 }
 0x152   :  { %v3485_v11 = vpop.f32.mrf.mxu0  ;;  %v3613_v12 = vpop.f32.mrf.mxu1  ;;  %v3273_v2 = vpack.c.bf16 %v2927_v51, %v2927_v51 }
 0x153   :  { %v2698_v13 = vadd.f32 %v2697_v9, %v2438_v5  ;;  %v4379_v14 = vadd.f32 %v2845_v10, %v2566_v8  ;;  %v2442_v30 = vmax.f32 %v3485_v11, 0.0  ;;  %v2570_v33 = vmax.f32 %v3613_v12, 0.0 }
 0x154   :  { %v1611_v15 = vpop.f32.mrf.mxu0  ;;  %v2123_v16 = vpop.f32.mrf.mxu1 }
 0x155   :  { %v2440_v19 = vmax.f32 %v1611_v15, 0.0  ;;  %v2568_v20 = vmax.f32 %v2123_v16, 0.0  ;;  %v2699_v22 = vrot.slane %v2698_v13, 4 }
 0x156   :  { %v3488_v23 = vpop.f32.mrf.mxu0  ;;  %v3616_v24 = vpop.f32.mrf.mxu1 }
 0x157   :  { %v2705_v27 = vadd.f32 %v2440_v19, %v2439_v17  ;;  %v2853_v28 = vadd.f32 %v2568_v20, %v2567_v18  ;;  %v2700_v29 = vadd.f32 %v2699_v22, %v2698_v13  ;;  %v2445_v55 = vmax.f32 %v3488_v23, 0.0 }
 0x158   :  { %v1624_v31 = vpop.f32.mrf.mxu0  ;;  %v2136_v32 = vpop.f32.mrf.mxu1  ;;  %v2573_v56 = vmax.f32 %v3616_v24, 0.0  ;;  %v2967_v19 = vunpack.c.l.b16 %v3273_v2 }
 0x159   :  { %v2706_v34 = vadd.f32 %v2705_v27, %v2441_v25  ;;  %v2854_v35 = vadd.f32 %v2853_v28, %v2569_v26  ;;  %v2571_v36 = vmax.f32 %v2136_v32, 0.0  ;;  %v2701_v38 = vrot.slane %v2700_v29, 2 }
 0x15a   :  { %v3489_v39 = vpop.f32.mrf.mxu0  ;;  %v3617_v40 = vpop.f32.mrf.mxu1  ;;  %v2443_v41 = vmax.f32 %v1624_v31, 0.0 }
 0x15b   :  { %v2707_v42 = vadd.f32 %v2706_v34, %v2442_v30  ;;  %v2855_v43 = vadd.f32 %v2854_v35, %v2570_v33  ;;  %v2702_v44 = vadd.f32 %v2701_v38, %v2700_v29  ;;  %v2446_v60 = vmax.f32 %v3489_v39, 0.0 }
 0x15c   :  { %v1627_v45 = vpop.f32.mrf.mxu0  ;;  %v2139_v46 = vpop.f32.mrf.mxu1  ;;  %v2574_v6 = vmax.f32 %v3617_v40, 0.0 }
 0x15d   :  { %v2708_v47 = vadd.f32 %v2707_v42, %v2443_v41  ;;  %v2856_v48 = vadd.f32 %v2855_v43, %v2571_v36  ;;  %v2444_v49 = vmax.f32 %v1627_v45, 0.0  ;;  %v2572_v50 = vmax.f32 %v2139_v46, 0.0 }
 0x15e   :  { %v2703_v52 = vrot.slane %v2702_v44, 1  ;;  %v3492_v53 = vpop.f32.mrf.mxu0  ;;  %v3620_v54 = vpop.f32.mrf.mxu1 }
 0x15f   :  { %v2709_v57 = vadd.f32 %v2708_v47, %v2444_v49  ;;  %v2857_v58 = vadd.f32 %v2856_v48, %v2572_v50  ;;  %v2449_v23 = vmax.f32 %v3492_v53, 0.0  ;;  %v2577_v24 = vmax.f32 %v3620_v54, 0.0 }
 0x160   :  { %v2704_v59 = vadd.f32 %v2703_v52, %v2702_v44  ;;  %v1640_v61 = vpop.f32.mrf.mxu0  ;;  %v2152_v62 = vpop.f32.mrf.mxu1 }
 0x161   :  { %v2710_v63 = vadd.f32 %v2709_v57, %v2445_v55  ;;  %v2858_v0 = vadd.f32 %v2857_v58, %v2573_v56  ;;  %v2575_v1 = vmax.f32 %v2152_v62, 0.0  ;;  %v2447_v8 = vmax.f32 %v1640_v61, 0.0 }
 0x162   :  { %v2928_v3 = vmul.f32 0.00390625, %v2704_v59  ;;  %v3493_v4 = vpop.f32.mrf.mxu0  ;;  %v3621_v5 = vpop.f32.mrf.mxu1 }
 0x163   :  { %v2711_v9 = vadd.f32 %v2710_v63, %v2446_v60  ;;  %v2859_v10 = vadd.f32 %v2858_v0, %v2574_v6  ;;  %v2450_v27 = vmax.f32 %v3493_v4, 0.0  ;;  %v2578_v31 = vmax.f32 %v3621_v5, 0.0 }
 0x164   :  { %v3274_v11 = vpack.c.bf16 %v2928_v3, %v2928_v3  ;;  %v1643_v12 = vpop.f32.mrf.mxu0  ;;  %v2155_v13 = vpop.f32.mrf.mxu1 }
 0x165   :  { %v2712_v15 = vadd.f32 %v2711_v9, %v2447_v8  ;;  %v2860_v16 = vadd.f32 %v2859_v10, %v2575_v1  ;;  %v2448_v17 = vmax.f32 %v1643_v12, 0.0  ;;  %v2576_v18 = vmax.f32 %v2155_v13, 0.0 }
 0x166   :  { %v2968_v20 = vunpack.c.l.b16 %v3274_v11  ;;  %v3496_v21 = vpop.f32.mrf.mxu0  ;;  %v3624_v22 = vpop.f32.mrf.mxu1 }
 0x167   :  { %v2713_v25 = vadd.f32 %v2712_v15, %v2448_v17  ;;  %v2861_v26 = vadd.f32 %v2860_v16, %v2576_v18  ;;  %v2453_v48 = vmax.f32 %v3496_v21, 0.0  ;;  %v2581_v49 = vmax.f32 %v3624_v22, 0.0 }
 0x168   :  { %v1656_v28 = vpop.f32.mrf.mxu0  ;;  %v2168_v29 = vpop.f32.mrf.mxu1  ;;  %v4382_v30 = vsel %vm2975_vm2, %v2968_v20, %v2967_v19 }
 0x169   :  { %v2714_v32 = vadd.f32 %v2713_v25, %v2449_v23  ;;  %v2862_v33 = vadd.f32 %v2861_v26, %v2577_v24  ;;  %v2579_v34 = vmax.f32 %v2168_v29, 0.0  ;;  %v2451_v37 = vmax.f32 %v1656_v28, 0.0 }
 0x16a   :  { %v3497_v35 = vpop.f32.mrf.mxu0  ;;  %v3625_v36 = vpop.f32.mrf.mxu1 }
 0x16b   :  { %v2715_v38 = vadd.f32 %v2714_v32, %v2450_v27  ;;  %v2863_v39 = vadd.f32 %v2862_v33, %v2578_v31  ;;  %v2454_v52 = vmax.f32 %v3497_v35, 0.0  ;;  %v2582_v55 = vmax.f32 %v3625_v36, 0.0 }
 0x16c   :  { %v1659_v40 = vpop.f32.mrf.mxu0  ;;  %v2171_v41 = vpop.f32.mrf.mxu1 }
 0x16d   :  { %v2716_v42 = vadd.f32 %v2715_v38, %v2451_v37  ;;  %v2864_v43 = vadd.f32 %v2863_v39, %v2579_v34  ;;  %v2452_v44 = vmax.f32 %v1659_v40, 0.0  ;;  %v2580_v45 = vmax.f32 %v2171_v41, 0.0 }
 0x16e   :  { %v3500_v46 = vpop.f32.mrf.mxu0  ;;  %v3628_v47 = vpop.f32.mrf.mxu1 }
 0x16f   :  { %v2717_v50 = vadd.f32 %v2716_v42, %v2452_v44  ;;  %v2865_v51 = vadd.f32 %v2864_v43, %v2580_v45  ;;  %v2457_v9 = vmax.f32 %v3500_v46, 0.0  ;;  %v2585_v10 = vmax.f32 %v3628_v47, 0.0 }
 0x170   :  { %v1672_v53 = vpop.f32.mrf.mxu0  ;;  %v2184_v54 = vpop.f32.mrf.mxu1 }
 0x171   :  { %v2718_v56 = vadd.f32 %v2717_v50, %v2453_v48  ;;  %v2866_v57 = vadd.f32 %v2865_v51, %v2581_v49  ;;  %v2583_v58 = vmax.f32 %v2184_v54, 0.0  ;;  %v2455_v61 = vmax.f32 %v1672_v53, 0.0 }
 0x172   :  { %v3501_v59 = vpop.f32.mrf.mxu0  ;;  %v3629_v60 = vpop.f32.mrf.mxu1 }
 0x173   :  { %v2719_v62 = vadd.f32 %v2718_v56, %v2454_v52  ;;  %v2867_v6 = vadd.f32 %v2866_v57, %v2582_v55  ;;  %v2458_v13 = vmax.f32 %v3501_v59, 0.0  ;;  %v2586_v17 = vmax.f32 %v3629_v60, 0.0 }
 0x174   :  { %v1675_v63 = vpop.f32.mrf.mxu0  ;;  %v2187_v0 = vpop.f32.mrf.mxu1 }
 0x175   :  { %v2720_v1 = vadd.f32 %v2719_v62, %v2455_v61  ;;  %v2868_v2 = vadd.f32 %v2867_v6, %v2583_v58  ;;  %v2456_v3 = vmax.f32 %v1675_v63, 0.0  ;;  %v2584_v4 = vmax.f32 %v2187_v0, 0.0 }
 0x176   :  { %v3504_v5 = vpop.f32.mrf.mxu0  ;;  %v3632_v8 = vpop.f32.mrf.mxu1 }
 0x177   :  { %v2721_v11 = vadd.f32 %v2720_v1, %v2456_v3  ;;  %v2869_v12 = vadd.f32 %v2868_v2, %v2584_v4  ;;  %v2461_v35 = vmax.f32 %v3504_v5, 0.0  ;;  %v2589_v36 = vmax.f32 %v3632_v8, 0.0 }
 0x178   :  { %v1688_v15 = vpop.f32.mrf.mxu0  ;;  %v2200_v16 = vpop.f32.mrf.mxu1 }
 0x179   :  { %v2722_v18 = vadd.f32 %v2721_v11, %v2457_v9  ;;  %v2870_v19 = vadd.f32 %v2869_v12, %v2585_v10  ;;  %v2587_v20 = vmax.f32 %v2200_v16, 0.0  ;;  %v2459_v23 = vmax.f32 %v1688_v15, 0.0 }
 0x17a   :  { %v3505_v21 = vpop.f32.mrf.mxu0  ;;  %v3633_v22 = vpop.f32.mrf.mxu1 }
 0x17b   :  { %v2723_v24 = vadd.f32 %v2722_v18, %v2458_v13  ;;  %v2871_v25 = vadd.f32 %v2870_v19, %v2586_v17  ;;  %v2462_v39 = vmax.f32 %v3505_v21, 0.0  ;;  %v2590_v42 = vmax.f32 %v3633_v22, 0.0 }
 0x17c   :  { %v1691_v26 = vpop.f32.mrf.mxu0  ;;  %v2203_v27 = vpop.f32.mrf.mxu1 }
 0x17d   :  { %v2724_v28 = vadd.f32 %v2723_v24, %v2459_v23  ;;  %v2872_v29 = vadd.f32 %v2871_v25, %v2587_v20  ;;  %v2460_v31 = vmax.f32 %v1691_v26, 0.0  ;;  %v2588_v32 = vmax.f32 %v2203_v27, 0.0 }
 0x17e   :  { %v3508_v33 = vpop.f32.mrf.mxu0  ;;  %v3636_v34 = vpop.f32.mrf.mxu1 }
 0x17f   :  { %v2725_v37 = vadd.f32 %v2724_v28, %v2460_v31  ;;  %v2873_v38 = vadd.f32 %v2872_v29, %v2588_v32  ;;  %v2465_v59 = vmax.f32 %v3508_v33, 0.0  ;;  %v2593_v60 = vmax.f32 %v3636_v34, 0.0 }
 0x180   :  { %v1704_v40 = vpop.f32.mrf.mxu0  ;;  %v2216_v41 = vpop.f32.mrf.mxu1 }
 0x181   :  { %v2726_v43 = vadd.f32 %v2725_v37, %v2461_v35  ;;  %v2874_v44 = vadd.f32 %v2873_v38, %v2589_v36  ;;  %v2591_v45 = vmax.f32 %v2216_v41, 0.0  ;;  %v2463_v48 = vmax.f32 %v1704_v40, 0.0 }
 0x182   :  { %v3509_v46 = vpop.f32.mrf.mxu0  ;;  %v3637_v47 = vpop.f32.mrf.mxu1 }
 0x183   :  { %v2727_v49 = vadd.f32 %v2726_v43, %v2462_v39  ;;  %v2875_v50 = vadd.f32 %v2874_v44, %v2590_v42  ;;  %v2466_v6 = vmax.f32 %v3509_v46, 0.0  ;;  %v2594_v1 = vmax.f32 %v3637_v47, 0.0 }
 0x184   :  { %v1707_v51 = vpop.f32.mrf.mxu0  ;;  %v2219_v52 = vpop.f32.mrf.mxu1 }
 0x185   :  { %v2728_v53 = vadd.f32 %v2727_v49, %v2463_v48  ;;  %v2876_v54 = vadd.f32 %v2875_v50, %v2591_v45  ;;  %v2464_v55 = vmax.f32 %v1707_v51, 0.0  ;;  %v2592_v56 = vmax.f32 %v2219_v52, 0.0 }
 0x186   :  { %v3512_v57 = vpop.f32.mrf.mxu0  ;;  %v3640_v58 = vpop.f32.mrf.mxu1 }
 0x187   :  { %v2729_v61 = vadd.f32 %v2728_v53, %v2464_v55  ;;  %v2877_v62 = vadd.f32 %v2876_v54, %v2592_v56  ;;  %v2469_v21 = vmax.f32 %v3512_v57, 0.0  ;;  %v2597_v22 = vmax.f32 %v3640_v58, 0.0 }
 0x188   :  { %v1720_v63 = vpop.f32.mrf.mxu0  ;;  %v2232_v0 = vpop.f32.mrf.mxu1 }
 0x189   :  { %v2730_v2 = vadd.f32 %v2729_v61, %v2465_v59  ;;  %v2878_v3 = vadd.f32 %v2877_v62, %v2593_v60  ;;  %v2595_v4 = vmax.f32 %v2232_v0, 0.0  ;;  %v2467_v9 = vmax.f32 %v1720_v63, 0.0 }
 0x18a   :  { %v3513_v5 = vpop.f32.mrf.mxu0  ;;  %v3641_v8 = vpop.f32.mrf.mxu1 }
 0x18b   :  { %v2731_v10 = vadd.f32 %v2730_v2, %v2466_v6  ;;  %v2879_v11 = vadd.f32 %v2878_v3, %v2594_v1  ;;  %v2470_v27 = vmax.f32 %v3513_v5, 0.0  ;;  %v2598_v28 = vmax.f32 %v3641_v8, 0.0 }
 0x18c   :  { %v1723_v12 = vpop.f32.mrf.mxu0  ;;  %v2235_v13 = vpop.f32.mrf.mxu1 }
 0x18d   :  { %v2732_v15 = vadd.f32 %v2731_v10, %v2467_v9  ;;  %v2880_v16 = vadd.f32 %v2879_v11, %v2595_v4  ;;  %v2468_v17 = vmax.f32 %v1723_v12, 0.0  ;;  %v2596_v18 = vmax.f32 %v2235_v13, 0.0 }
 0x18e   :  { %v3516_v19 = vpop.f32.mrf.mxu0  ;;  %v3644_v20 = vpop.f32.mrf.mxu1 }
 0x18f   :  { %v2733_v23 = vadd.f32 %v2732_v15, %v2468_v17  ;;  %v2881_v24 = vadd.f32 %v2880_v16, %v2596_v18  ;;  %v2473_v43 = vmax.f32 %v3516_v19, 0.0  ;;  %v2601_v47 = vmax.f32 %v3644_v20, 0.0 }
 0x190   :  { %v1736_v25 = vpop.f32.mrf.mxu0  ;;  %v2248_v26 = vpop.f32.mrf.mxu1 }
 0x191   :  { %v2734_v29 = vadd.f32 %v2733_v23, %v2469_v21  ;;  %v2882_v31 = vadd.f32 %v2881_v24, %v2597_v22  ;;  %v2471_v36 = vmax.f32 %v1736_v25, 0.0  ;;  %v2599_v40 = vmax.f32 %v2248_v26, 0.0 }
 0x192   :  { %v3517_v32 = vpop.f32.mrf.mxu0  ;;  %v3645_v33 = vpop.f32.mrf.mxu1 }
 0x193   :  { %v2735_v34 = vadd.f32 %v2734_v29, %v2470_v27  ;;  %v4384_v35 = vadd.f32 %v2882_v31, %v2598_v28  ;;  %v2474_v50 = vmax.f32 %v3517_v32, 0.0  ;;  %v2602_v54 = vmax.f32 %v3645_v33, 0.0 }
 0x194   :  { %v1739_v37 = vpop.f32.mrf.mxu0  ;;  %v2251_v38 = vpop.f32.mrf.mxu1 }
 0x195   :  { %v2736_v39 = vrot.slane %v2735_v34, 4  ;;  %v2472_v41 = vmax.f32 %v1739_v37, 0.0  ;;  %v2600_v42 = vmax.f32 %v2251_v38, 0.0 }
 0x196   :  { %v3520_v44 = vpop.f32.mrf.mxu0  ;;  %v3648_v45 = vpop.f32.mrf.mxu1 }
 0x197   :  { %v2737_v46 = vadd.f32 %v2736_v39, %v2735_v34  ;;  %v2742_v48 = vadd.f32 %v2472_v41, %v2471_v36  ;;  %v2890_v49 = vadd.f32 %v2600_v42, %v2599_v40  ;;  %v2477_v11 = vmax.f32 %v3520_v44, 0.0 }
 0x198   :  { %v1752_v51 = vpop.f32.mrf.mxu0  ;;  %v2264_v52 = vpop.f32.mrf.mxu1  ;;  %v2605_v12 = vmax.f32 %v3648_v45, 0.0 }
 0x199   :  { %v2738_v53 = vrot.slane %v2737_v46, 2  ;;  %v2743_v55 = vadd.f32 %v2742_v48, %v2473_v43  ;;  %v2891_v56 = vadd.f32 %v2890_v49, %v2601_v47  ;;  %v2603_v57 = vmax.f32 %v2264_v52, 0.0 }
 0x19a   :  { %v3521_v58 = vpop.f32.mrf.mxu0  ;;  %v3649_v59 = vpop.f32.mrf.mxu1  ;;  %v2475_v61 = vmax.f32 %v1752_v51, 0.0 }
 0x19b   :  { %v2739_v60 = vadd.f32 %v2738_v53, %v2737_v46  ;;  %v2744_v62 = vadd.f32 %v2743_v55, %v2474_v50  ;;  %v2892_v6 = vadd.f32 %v2891_v56, %v2602_v54  ;;  %v2478_v19 = vmax.f32 %v3521_v58, 0.0 }
 0x19c   :  { %v1755_v63 = vpop.f32.mrf.mxu0  ;;  %v2267_v0 = vpop.f32.mrf.mxu1  ;;  %v2606_v20 = vmax.f32 %v3649_v59, 0.0 }
 0x19d   :  { %v2740_v1 = vrot.slane %v2739_v60, 1  ;;  %v2745_v2 = vadd.f32 %v2744_v62, %v2475_v61  ;;  %v2893_v3 = vadd.f32 %v2892_v6, %v2603_v57  ;;  %v2476_v4 = vmax.f32 %v1755_v63, 0.0 }
 0x19e   :  { %v2604_v5 = vmax.f32 %v2267_v0, 0.0  ;;  %v3524_v8 = vpop.f32.mrf.mxu0  ;;  %v3652_v9 = vpop.f32.mrf.mxu1 }
 0x19f   :  { %v2741_v10 = vadd.f32 %v2740_v1, %v2739_v60  ;;  %v2746_v13 = vadd.f32 %v2745_v2, %v2476_v4  ;;  %v2481_v42 = vmax.f32 %v3524_v8, 0.0  ;;  %v2609_v43 = vmax.f32 %v3652_v9, 0.0 }
 0x1a0   :  { %v2894_v15 = vadd.f32 %v2893_v3, %v2604_v5  ;;  %v1768_v16 = vpop.f32.mrf.mxu0  ;;  %v2280_v17 = vpop.f32.mrf.mxu1 }
 0x1a1   :  { %v2929_v18 = vmul.f32 0.00390625, %v2741_v10  ;;  %v2747_v21 = vadd.f32 %v2746_v13, %v2477_v11  ;;  %v2607_v23 = vmax.f32 %v2280_v17, 0.0  ;;  %v2479_v27 = vmax.f32 %v1768_v16, 0.0 }
 0x1a2   :  { %v2895_v22 = vadd.f32 %v2894_v15, %v2605_v12  ;;  %v3525_v24 = vpop.f32.mrf.mxu0  ;;  %v3653_v25 = vpop.f32.mrf.mxu1 }
 0x1a3   :  { %v3275_v26 = vpack.c.bf16 %v2929_v18, %v2929_v18  ;;  %v2748_v28 = vadd.f32 %v2747_v21, %v2478_v19  ;;  %v2482_v48 = vmax.f32 %v3525_v24, 0.0  ;;  %v2610_v49 = vmax.f32 %v3653_v25, 0.0 }
 0x1a4   :  { %v2896_v29 = vadd.f32 %v2895_v22, %v2606_v20  ;;  %v1771_v31 = vpop.f32.mrf.mxu0  ;;  %v2283_v32 = vpop.f32.mrf.mxu1 }
 0x1a5   :  { %v2969_v33 = vunpack.c.l.b16 %v3275_v26  ;;  %v2480_v34 = vmax.f32 %v1771_v31, 0.0  ;;  %v2608_v36 = vmax.f32 %v2283_v32, 0.0  ;;  %v2749_v37 = vadd.f32 %v2748_v28, %v2479_v27 }
 0x1a6   :  { %v2897_v38 = vadd.f32 %v2896_v29, %v2607_v23  ;;  %v3528_v39 = vpop.f32.mrf.mxu0  ;;  %v3656_v40 = vpop.f32.mrf.mxu1 }
 0x1a7   :  { %v4387_v41 = vsel %vm2977_vm3, %v2969_v33, %v4382_v30  ;;  %v2750_v44 = vadd.f32 %v2749_v37, %v2480_v34  ;;  %v2485_v0 = vmax.f32 %v3528_v39, 0.0  ;;  %v2613_v1 = vmax.f32 %v3656_v40, 0.0 }
 0x1a8   :  { %v2898_v45 = vadd.f32 %v2897_v38, %v2608_v36  ;;  %v1784_v46 = vpop.f32.mrf.mxu0  ;;  %v2296_v47 = vpop.f32.mrf.mxu1 }
 0x1a9   :  { %v2751_v50 = vadd.f32 %v2750_v44, %v2481_v42  ;;  %v2611_v52 = vmax.f32 %v2296_v47, 0.0  ;;  %v2483_v55 = vmax.f32 %v1784_v46, 0.0 }
 0x1aa   :  { %v2899_v51 = vadd.f32 %v2898_v45, %v2609_v43  ;;  %v3529_v53 = vpop.f32.mrf.mxu0  ;;  %v3657_v54 = vpop.f32.mrf.mxu1 }
 0x1ab   :  { %v2752_v56 = vadd.f32 %v2751_v50, %v2482_v48  ;;  %v2486_v8 = vmax.f32 %v3529_v53, 0.0  ;;  %v2614_v9 = vmax.f32 %v3657_v54, 0.0 }
 0x1ac   :  { %v2900_v57 = vadd.f32 %v2899_v51, %v2610_v49  ;;  %v1787_v58 = vpop.f32.mrf.mxu0  ;;  %v2299_v59 = vpop.f32.mrf.mxu1 }
 0x1ad   :  { %v2484_v30 = vmax.f32 %v1787_v58, 0.0  ;;  %v2612_v60 = vmax.f32 %v2299_v59, 0.0  ;;  %v2753_v61 = vadd.f32 %v2752_v56, %v2483_v55 }
 0x1ae   :  { %v2901_v62 = vadd.f32 %v2900_v57, %v2611_v52  ;;  %v3532_v6 = vpop.f32.mrf.mxu0  ;;  %v3660_v63 = vpop.f32.mrf.mxu1 }
 0x1af   :  { %v2754_v2 = vadd.f32 %v2753_v61, %v2484_v30  ;;  %v2489_v27 = vmax.f32 %v3532_v6, 0.0  ;;  %v2617_v28 = vmax.f32 %v3660_v63, 0.0 }
 0x1b0   :  { %v2902_v3 = vadd.f32 %v2901_v62, %v2612_v60  ;;  %v1800_v4 = vpop.f32.mrf.mxu0  ;;  %v2312_v5 = vpop.f32.mrf.mxu1 }
 0x1b1   :  { %v2755_v10 = vadd.f32 %v2754_v2, %v2485_v0  ;;  %v2615_v12 = vmax.f32 %v2312_v5, 0.0  ;;  %v2487_v16 = vmax.f32 %v1800_v4, 0.0 }
 0x1b2   :  { %v2903_v11 = vadd.f32 %v2902_v3, %v2613_v1  ;;  %v3533_v13 = vpop.f32.mrf.mxu0  ;;  %v3661_v15 = vpop.f32.mrf.mxu1 }
 0x1b3   :  { %v2756_v17 = vadd.f32 %v2755_v10, %v2486_v8  ;;  %v2490_v34 = vmax.f32 %v3533_v13, 0.0  ;;  %v2618_v36 = vmax.f32 %v3661_v15, 0.0  ;;  %v2810_v15 = vrot.slane %v4375_v7, 4 }
 0x1b4   :  { %v2904_v18 = vadd.f32 %v2903_v11, %v2614_v9  ;;  %v1803_v19 = vpop.f32.mrf.mxu0  ;;  %v2315_v20 = vpop.f32.mrf.mxu1 }
 0x1b5   :  { %v2488_v21 = vmax.f32 %v1803_v19, 0.0  ;;  %v2616_v22 = vmax.f32 %v2315_v20, 0.0  ;;  %v2757_v23 = vadd.f32 %v2756_v17, %v2487_v16  ;;  %v2847_v16 = vrot.slane %v4379_v14, 4 }
 0x1b6   :  { %v2905_v24 = vadd.f32 %v2904_v18, %v2615_v12  ;;  %v3536_v25 = vpop.f32.mrf.mxu0  ;;  %v3664_v26 = vpop.f32.mrf.mxu1 }
 0x1b7   :  { %v2758_v29 = vadd.f32 %v2757_v23, %v2488_v21  ;;  %v2493_v54 = vmax.f32 %v3536_v25, 0.0  ;;  %v2621_v55 = vmax.f32 %v3664_v26, 0.0  ;;  %v2884_v23 = vrot.slane %v4384_v35, 4 }
 0x1b8   :  { %v2906_v31 = vadd.f32 %v2905_v24, %v2616_v22  ;;  %v1816_v32 = vpop.f32.mrf.mxu0  ;;  %v2328_v33 = vpop.f32.mrf.mxu1 }
 0x1b9   :  { %v2759_v37 = vadd.f32 %v2758_v29, %v2489_v27  ;;  %v2619_v39 = vmax.f32 %v2328_v33, 0.0  ;;  %v2491_v43 = vmax.f32 %v1816_v32, 0.0  ;;  %v2811_v32 = vadd.f32 %v2810_v15, %v4375_v7 }
 0x1ba   :  { %v2907_v38 = vadd.f32 %v2906_v31, %v2617_v28  ;;  %v3537_v40 = vpop.f32.mrf.mxu0  ;;  %v3665_v42 = vpop.f32.mrf.mxu1  ;;  %v2848_v33 = vadd.f32 %v2847_v16, %v4379_v14 }
 0x1bb   :  { %v2760_v44 = vadd.f32 %v2759_v37, %v2490_v34  ;;  %v2494_v30 = vmax.f32 %v3537_v40, 0.0  ;;  %v2622_v60 = vmax.f32 %v3665_v42, 0.0  ;;  %v2885_v40 = vadd.f32 %v2884_v23, %v4384_v35 }
 0x1bc   :  { %v2908_v45 = vadd.f32 %v2907_v38, %v2618_v36  ;;  %v1819_v46 = vpop.f32.mrf.mxu0  ;;  %v2331_v47 = vpop.f32.mrf.mxu1 }
 0x1bd   :  { %v2492_v48 = vmax.f32 %v1819_v46, 0.0  ;;  %v2620_v49 = vmax.f32 %v2331_v47, 0.0  ;;  %v2761_v50 = vadd.f32 %v2760_v44, %v2491_v43  ;;  %v2812_v46 = vrot.slane %v2811_v32, 2 }
 0x1be   :  { %v2909_v51 = vadd.f32 %v2908_v45, %v2619_v39  ;;  %v3540_v52 = vpop.f32.mrf.mxu0  ;;  %v3668_v53 = vpop.f32.mrf.mxu1  ;;  %v2849_v47 = vrot.slane %v2848_v33, 2  ;;  %v2886_v7 = vrot.slane %v2885_v40, 2 }
 0x1bf   :  { %v2762_v56 = vadd.f32 %v2761_v50, %v2492_v48  ;;  %v2497_v17 = vmax.f32 %v3540_v52, 0.0  ;;  %v2625_v18 = vmax.f32 %v3668_v53, 0.0 }
 0x1c0   :  { %v2910_v57 = vadd.f32 %v2909_v51, %v2620_v49  ;;  %v1832_v58 = vpop.f32.mrf.mxu0  ;;  %v2344_v59 = vpop.f32.mrf.mxu1  ;;  %v2887_v35 = vadd.f32 %v2886_v7, %v2885_v40 }
 0x1c1   :  { %v2763_v61 = vadd.f32 %v2762_v56, %v2493_v54  ;;  %v2623_v6 = vmax.f32 %v2344_v59, 0.0  ;;  %v2495_v1 = vmax.f32 %v1832_v58, 0.0  ;;  %v2850_v56 = vadd.f32 %v2849_v47, %v2848_v33 }
 0x1c2   :  { %v2911_v62 = vadd.f32 %v2910_v57, %v2621_v55  ;;  %v3541_v63 = vpop.f32.mrf.mxu0  ;;  %v3669_v0 = vpop.f32.mrf.mxu1  ;;  %v2813_v55 = vadd.f32 %v2812_v46, %v2811_v32 }
 0x1c3   :  { %v2764_v2 = vadd.f32 %v2763_v61, %v2494_v30  ;;  %v2498_v24 = vmax.f32 %v3541_v63, 0.0  ;;  %v2626_v25 = vmax.f32 %v3669_v0, 0.0  ;;  %v2851_v61 = vrot.slane %v2850_v56, 1 }
 0x1c4   :  { %v2912_v3 = vadd.f32 %v2911_v62, %v2622_v60  ;;  %v1835_v4 = vpop.f32.mrf.mxu0  ;;  %v2347_v5 = vpop.f32.mrf.mxu1  ;;  %v2814_v60 = vrot.slane %v2813_v55, 1  ;;  %v2888_v63 = vrot.slane %v2887_v35, 1 }
 0x1c5   :  { %v2496_v8 = vmax.f32 %v1835_v4, 0.0  ;;  %v2624_v9 = vmax.f32 %v2347_v5, 0.0  ;;  %v2765_v10 = vadd.f32 %v2764_v2, %v2495_v1 }
 0x1c6   :  { %v2913_v11 = vadd.f32 %v2912_v3, %v2623_v6  ;;  %v3544_v12 = vpop.f32.mrf.mxu0  ;;  %v3672_v13 = vpop.f32.mrf.mxu1  ;;  %v2815_v2 = vadd.f32 %v2814_v60, %v2813_v55  ;;  %v2852_v3 = vadd.f32 %v2851_v61, %v2850_v56 }
 0x1c7   :  { %v2766_v19 = vadd.f32 %v2765_v10, %v2496_v8  ;;  %v2501_v48 = vmax.f32 %v3544_v12, 0.0  ;;  %v2629_v49 = vmax.f32 %v3672_v13, 0.0  ;;  %v2889_v8 = vadd.f32 %v2888_v63, %v2887_v35 }
 0x1c8   :  { %v2914_v20 = vadd.f32 %v2913_v11, %v2624_v9  ;;  %v1848_v21 = vpop.f32.mrf.mxu0  ;;  %v2360_v22 = vpop.f32.mrf.mxu1  ;;  %v2931_v11 = vmul.f32 0.00390625, %v2815_v2  ;;  %v2932_v15 = vmul.f32 0.00390625, %v2852_v3 }
 0x1c9   :  { %v2767_v26 = vadd.f32 %v2766_v19, %v2497_v17  ;;  %v2627_v28 = vmax.f32 %v2360_v22, 0.0  ;;  %v2499_v34 = vmax.f32 %v1848_v21, 0.0  ;;  %v2933_v16 = vmul.f32 0.00390625, %v2889_v8 }
 0x1ca   :  { %v2915_v27 = vadd.f32 %v2914_v20, %v2625_v18  ;;  %v3545_v29 = vpop.f32.mrf.mxu0  ;;  %v3673_v31 = vpop.f32.mrf.mxu1  ;;  %v3277_v19 = vpack.c.bf16 %v2931_v11, %v2931_v11  ;;  %v3278_v21 = vpack.c.bf16 %v2932_v15, %v2932_v15 }
 0x1cb   :  { %v2768_v36 = vadd.f32 %v2767_v26, %v2498_v24  ;;  %v2502_v52 = vmax.f32 %v3545_v29, 0.0  ;;  %v2630_v14 = vmax.f32 %v3673_v31, 0.0  ;;  %v3279_v22 = vpack.c.bf16 %v2933_v16, %v2933_v16 }
 0x1cc   :  { %v2916_v37 = vadd.f32 %v2915_v27, %v2626_v25  ;;  %v1851_v38 = vpop.f32.mrf.mxu0  ;;  %v2363_v39 = vpop.f32.mrf.mxu1  ;;  %v2971_v25 = vunpack.c.l.b16 %v3277_v19  ;;  %v2972_v26 = vunpack.c.l.b16 %v3278_v21 }
 0x1cd   :  { %v2500_v42 = vmax.f32 %v1851_v38, 0.0  ;;  %v2628_v43 = vmax.f32 %v2363_v39, 0.0  ;;  %v2769_v44 = vadd.f32 %v2768_v36, %v2499_v34 }
 0x1ce   :  { %v2917_v45 = vadd.f32 %v2916_v37, %v2627_v28  ;;  %v2973_v28 = vunpack.c.l.b16 %v3279_v22 }
 0x1cf   :  { %v2770_v50 = vadd.f32 %v2769_v44, %v2500_v42 }
 0x1d0   :  { %v2918_v51 = vadd.f32 %v2917_v45, %v2628_v43 }
 0x1d1   :  { %v2771_v53 = vadd.f32 %v2770_v50, %v2501_v48 }
 0x1d2   :  { %v2919_v54 = vadd.f32 %v2918_v51, %v2629_v49 }
 0x1d3   :  { %v2772_v57 = vadd.f32 %v2771_v53, %v2502_v52 }
 0x1d4   :  { %v2920_v58 = vadd.f32 %v2919_v54, %v2630_v14 }
 0x1d5   :  { %v2773_v59 = vrot.slane %v2772_v57, 4 }
 0x1d6   :  { %v2921_v30 = vrot.slane %v2920_v58, 4 }
 0x1d7   :  { %v2774_v62 = vadd.f32 %v2773_v59, %v2772_v57 }
 0x1d8   :  { %v2922_v6 = vadd.f32 %v2921_v30, %v2920_v58 }
 0x1d9   :  { %v2775_v0 = vrot.slane %v2774_v62, 2 }
 0x1da   :  { %v2923_v1 = vrot.slane %v2922_v6, 2 }
 0x1db   :  { %v2776_v4 = vadd.f32 %v2775_v0, %v2774_v62 }
 0x1dc   :  { %v2924_v5 = vadd.f32 %v2923_v1, %v2922_v6 }
 0x1dd   :  { %v2777_v9 = vrot.slane %v2776_v4, 1 }
 0x1de   :  { %v2925_v10 = vrot.slane %v2924_v5, 1 }
 0x1df   :  { %v2778_v12 = vadd.f32 %v2777_v9, %v2776_v4 }
 0x1e0   :  { %v2926_v13 = vadd.f32 %v2925_v10, %v2924_v5 }
 0x1e1   :  { %v2930_v17 = vmul.f32 0.00390625, %v2778_v12 }
 0x1e2   :  { %v2934_v18 = vmul.f32 0.00390625, %v2926_v13 }
 0x1e3   :  { %v3276_v20 = vpack.c.bf16 %v2930_v17, %v2930_v17 }
 0x1e4   :  { %v3280_v24 = vpack.c.bf16 %v2934_v18, %v2934_v18 }
 0x1e5   :  { %v2970_v23 = vunpack.c.l.b16 %v3276_v20 }
 0x1e6   :  { %v2974_v31 = vunpack.c.l.b16 %v3280_v24 }
 0x1e7   :  { %v2980_v27 = vsel %vm2979_vm4, %v2970_v23, %v4387_v41 }
 0x1e8   :  { %v2982_v29 = vsel %vm2981_vm5, %v2971_v25, %v2980_v27 }
 0x1e9   :  { %v2984_v32 = vsel %vm2983_vm6, %v2972_v26, %v2982_v29 }
 0x1ea   :  { %v2986_v33 = vsel %vm2985_vm7, %v2973_v28, %v2984_v32 }
 0x1eb   :  { %v2988_v34 = vsel %vm2987_vm8, %v2974_v31, %v2986_v33 }
 0x1ec   :  { %v2989_v36 = vpack.c.b16 %v2988_v34, %v2988_v34 }
 0x1ee   :  { %2991 = vst [vmem:[#allocation2] sm:$0xf] %v2989_v36 }
 0x1ef   :  { %3825 = shalt.err (!%p3822_p4)
}
 0x1f0   :  { %3001 = dma.vmem_to_hbm [thread:$0]  %s2999_s10, 64, %s4401_s2, [#allocation3]  }
 0x1f1   :  { %3834 = dma.done.wait [#allocation3], 64  }
 0x1f2   :  { %3835 = vsyncadd [#allocation3], 4294967232 }
 0x1f3   :  { %3005 = vsyncpa [#allocation3], 1 }

</bundles_post_ra>
